<compile_context>
chip_gen: v7x
topology: tpu7x:2x2x1
jax: 0.10.0
libtpu: 0.0.40
codegen_flags: <defaults>
</compile_context>

<pallas_src>
import functools

import jax
import jax.numpy as jnp
from jax import lax
from jax.experimental import pallas as pl
from jax.experimental.pallas import tpu as pltpu


def _round_up(x, m):
    return ((x + m - 1) // m) * m


# ----------------------------- fused residual blocks ----------------------------- #

def fused_blocks_kernel(x_ref,
                        w1_ref, b1_ref, g1_ref, be1_ref,
                        w2_ref, b2_ref, g2_ref, be2_ref,
                        *refs,
                        K, dilations, eps, real_c, collect_hidden):
    """All residual blocks in one kernel; activation stays in VMEM/vregs."""
    if collect_hidden:
        hid_ref, xout_ref, pad_ref = refs
    else:
        xfinal_ref, pad_ref = refs

    Bt, S, Cp = x_ref.shape
    max_pad = pad_ref.shape[1] - S
    inv_c = jnp.float32(1.0 / real_c)

    x = x_ref[...].astype(jnp.float32)                       # (Bt, S, Cp)

    # Zero the causal left-pad region once per grid step (the tail writes below
    # never touch it; the scratch persists across grid iterations).
    if max_pad > 0:
        pad_ref[:, :max_pad, :] = jnp.zeros((Bt, max_pad, Cp), pad_ref.dtype)

    def layernorm_relu(h, gamma, beta):
        # h: (Bt*S, Cp) f32.  Pad lanes of h are exactly zero, so sums over all
        # Cp lanes equal sums over the real C channels -> use E[h^2] - mean^2.
        mean = jnp.sum(h, axis=-1, keepdims=True) * inv_c
        ex2 = jnp.sum(h * h, axis=-1, keepdims=True) * inv_c
        var = ex2 - mean * mean
        normed = (h - mean) * lax.rsqrt(var + eps)
        # gamma/beta are zero in pad lanes -> pad lanes stay exactly zero.
        return jnp.maximum(normed * gamma + beta, 0.0)

    def causal_conv(inp_bsc, w, b, dil):
        # inp_bsc: (Bt, S, Cp) f32; w: (K*Cp, Cp) bf16; b: (1, Cp) f32.
        # Write the activation into the tail of the padded scratch; the first
        # max_pad rows stay zero, so static slices give causally shifted taps.
        pad_ref[:, max_pad:, :] = inp_bsc.astype(pad_ref.dtype)
        taps = [pad_ref[:, pl.ds(max_pad - (K - 1 - k) * dil, S), :]
                for k in range(K)]
        stacked = jnp.concatenate(taps, axis=-1).reshape(Bt * S, K * Cp)
        acc = jnp.dot(stacked.astype(w.dtype), w,
                      preferred_element_type=jnp.float32)    # one big MXU matmul
        return acc + b                                        # (Bt*S, Cp) f32

    for blk, d in enumerate(dilations):                       # static unroll
        h1 = causal_conv(x, w1_ref[blk], b1_ref[blk], d)
        o1 = layernorm_relu(h1, g1_ref[blk], be1_ref[blk])
        o1_bsc = o1.reshape(Bt, S, Cp)
        h2 = causal_conv(o1_bsc, w2_ref[blk], b2_ref[blk], 2 * d)
        o2 = layernorm_relu(h2, g2_ref[blk], be2_ref[blk])
        x = x + o2.reshape(Bt, S, Cp)                          # residual
        if collect_hidden:
            hid_ref[blk] = o1_bsc.astype(hid_ref.dtype)
            xout_ref[blk] = x.astype(xout_ref.dtype)

    if not collect_hidden:
        xfinal_ref[...] = x.astype(xfinal_ref.dtype)


def fused_residual_blocks(xp, prepared, collect_hidden=True):
    B, S, Cp = xp.shape
    K = prepared["kernel_size"]
    dilations = prepared["dilations"]
    nb = len(dilations)
    max_pad = (K - 1) * 2 * max(dilations)

    # Batch tiling: >= 2 grid steps when possible (v7x has 2 TensorCores) while
    # keeping each activation block modest.  Bt must divide B.
    target_steps = max(2 if B > 1 else 1, pl.cdiv(B * S * Cp * 4, 4 << 20))
    num_tiles = B
    for cand in range(min(target_steps, B), B + 1):
        if B % cand == 0:
            num_tiles = cand
            break
    Bt = B // num_tiles

    kernel = functools.partial(
        fused_blocks_kernel, K=K, dilations=dilations, eps=prepared["eps"],
        real_c=prepared["C"], collect_hidden=collect_hidden)

    def whole(arr):
        return pl.BlockSpec(arr.shape, lambda b, _nd=arr.ndim: (0,) * _nd)

    weight_names = ("w1s", "b1s", "g1s", "be1s", "w2s", "b2s", "g2s", "be2s")
    in_specs = [pl.BlockSpec((Bt, S, Cp), lambda b: (b, 0, 0))] + \
               [whole(prepared[n]) for n in weight_names]

    if collect_hidden:
        out_shape = (jax.ShapeDtypeStruct((nb, B, S, Cp), xp.dtype),
                     jax.ShapeDtypeStruct((nb, B, S, Cp), xp.dtype))
        out_specs = (pl.BlockSpec((nb, Bt, S, Cp), lambda b: (0, b, 0, 0)),
                     pl.BlockSpec((nb, Bt, S, Cp), lambda b: (0, b, 0, 0)))
    else:
        out_shape = jax.ShapeDtypeStruct((B, S, Cp), xp.dtype)
        out_specs = pl.BlockSpec((Bt, S, Cp), lambda b: (b, 0, 0))

    # Rough VMEM budget (inputs/outputs double-buffered by the pipeline) with
    # headroom; keeps the same tiling viable on v7x's 64 MiB VMEM.
    def nbytes(a):
        return a.size * a.dtype.itemsize
    act_block = Bt * S * Cp * 4
    weight_bytes = sum(nbytes(prepared[n]) for n in weight_names)
    out_block = (2 * nb if collect_hidden else 1) * act_block
    scratch_bytes = Bt * (max_pad + S) * Cp * 4
    est = 2 * (act_block + weight_bytes + out_block) + scratch_bytes
    vmem_limit = int(min(max(est + (4 << 20), 8 << 20), 48 << 20))

    return pl.pallas_call(
        kernel,
        grid=(num_tiles,),
        in_specs=in_specs,
        out_specs=out_specs,
        out_shape=out_shape,
        scratch_shapes=[pltpu.VMEM((Bt, max_pad + S, Cp), jnp.float32)],
        compiler_params=pltpu.CompilerParams(
            dimension_semantics=("parallel",),
            vmem_limit_bytes=vmem_limit),
    )(xp, *(prepared[n] for n in weight_names))


# --------------------------------- final linear ---------------------------------- #

def final_linear_kernel(h_ref, w_ref, b_ref, out_ref):
    h = h_ref[...].astype(w_ref.dtype)                         # bf16 MXU inputs
    out_ref[...] = (jnp.dot(h, w_ref[...], preferred_element_type=jnp.float32)
                    + b_ref[...]).astype(out_ref.dtype)


def final_linear(fh, prepared):
    # fh: (N, Cp) f32 ; returns (N, V) f32 logits.
    N, Cp = fh.shape
    V, Vp = prepared["V"], prepared["Vp"]
    w, b = prepared["final_w_p"], prepared["final_b_p"]

    tm = 256 if N >= 256 else _round_up(N, 8)
    n_pad = _round_up(N, tm)
    if n_pad != N:
        fh = jnp.pad(fh, ((0, n_pad - N), (0, 0)))
    if Vp % 512 == 0:
        tn = 512
    elif Vp % 256 == 0:
        tn = 256
    else:
        tn = 128

    out = pl.pallas_call(
        final_linear_kernel,
        grid=(n_pad // tm, Vp // tn),
        in_specs=[pl.BlockSpec((tm, Cp), lambda i, j: (i, 0)),
                  pl.BlockSpec((Cp, tn), lambda i, j: (0, j)),
                  pl.BlockSpec((1, tn), lambda i, j: (0, j))],
        out_specs=pl.BlockSpec((tm, tn), lambda i, j: (i, j)),
        out_shape=jax.ShapeDtypeStruct((n_pad, Vp), jnp.float32),
        compiler_params=pltpu.CompilerParams(
            dimension_semantics=("parallel", "parallel")),
    )(fh, w, b)
    return out[:N, :V]


# --------------------------- parameters & model wrapper --------------------------- #

def init_params(key, item_num, embed_size, hidden_size, kernel_size, dilations):
    """Raw f32 params matching the PyTorch module's layout/initialization."""
    nb = len(dilations)
    keys = jax.random.split(key, 2 + 4 * nb)
    stdv = (1.0 / item_num) ** 0.5
    params = {
        "embedding": jax.random.uniform(keys[0], (item_num, embed_size),
                                        jnp.float32, -stdv, stdv),
        "final_w": 0.01 * jax.random.normal(keys[1], (hidden_size, item_num),
                                            jnp.float32),
        "final_b": jnp.full((1, item_num), 0.1, jnp.float32),
        "blocks": [],
    }
    C, K = hidden_size, kernel_size
    bound = (1.0 / (C * K)) ** 0.5          # PyTorch Conv2d default uniform bound
    for i in range(nb):
        k0, k1, k2, k3 = keys[2 + 4 * i: 2 + 4 * i + 4]
        blk = (
            jax.random.uniform(k0, (K, C, C), jnp.float32, -bound, bound),  # conv1 W
            jax.random.uniform(k1, (1, C), jnp.float32, -bound, bound),     # conv1 b
            jnp.ones((1, C), jnp.float32),                                  # ln1 gamma
            jnp.zeros((1, C), jnp.float32),                                 # ln1 beta
            jax.random.uniform(k2, (K, C, C), jnp.float32, -bound, bound),  # conv2 W
            jax.random.uniform(k3, (1, C), jnp.float32, -bound, bound),     # conv2 b
            jnp.ones((1, C), jnp.float32),                                  # ln2 gamma
            jnp.zeros((1, C), jnp.float32),                                 # ln2 beta
        )
        params["blocks"].append(blk)
    return params


def prepare_params(raw, kernel_size, dilations, mxu_dtype=jnp.bfloat16, eps=1e-8):
    """Pad channels/vocab to 128-lane multiples, stack per-block weights, bf16 MXU weights."""
    emb = raw["embedding"]
    C = emb.shape[1]
    K = kernel_size
    Cp = _round_up(C, 128)
    V = raw["final_w"].shape[1]
    Vp = _round_up(V, 128)

    def pad_c(a, axes):
        pads = [(0, 0)] * a.ndim
        for ax in axes:
            pads[ax] = (0, Cp - C)
        return jnp.pad(a, pads)

    w1s, b1s, g1s, be1s, w2s, b2s, g2s, be2s = ([] for _ in range(8))
    for blk in raw["blocks"]:
        w1, b1, g1, be1, w2, b2, g2, be2 = blk
        w1s.append(pad_c(w1, (1, 2)).reshape(K * Cp, Cp))
        w2s.append(pad_c(w2, (1, 2)).reshape(K * Cp, Cp))
        b1s.append(pad_c(b1, (1,))); b2s.append(pad_c(b2, (1,)))
        g1s.append(pad_c(g1, (1,))); g2s.append(pad_c(g2, (1,)))
        be1s.append(pad_c(be1, (1,))); be2s.append(pad_c(be2, (1,)))

    return dict(
        embedding_p=pad_c(emb, (1,)),                              # (item_num, Cp) f32
        w1s=jnp.stack(w1s).astype(mxu_dtype),                      # (nb, K*Cp, Cp) bf16
        w2s=jnp.stack(w2s).astype(mxu_dtype),
        b1s=jnp.stack(b1s), b2s=jnp.stack(b2s),                    # (nb, 1, Cp) f32
        g1s=jnp.stack(g1s), g2s=jnp.stack(g2s),
        be1s=jnp.stack(be1s), be2s=jnp.stack(be2s),
        final_w_p=jnp.pad(raw["final_w"],
                          ((0, Cp - C), (0, Vp - V))).astype(mxu_dtype),
        final_b_p=jnp.pad(raw["final_b"], ((0, 0), (0, Vp - V))),
        C=C, Cp=Cp, V=V, Vp=Vp, kernel_size=K,
        dilations=tuple(dilations), eps=eps,
    )


def nextitnet_forward(x_ids, prepared, onecall=False, collect_hidden=True):
    C, Cp = prepared["C"], prepared["Cp"]
    xp = prepared["embedding_p"][x_ids]            # embedding gather (glue, plain JAX)
    B, S, _ = xp.shape

    outs = fused_residual_blocks(xp, prepared, collect_hidden=collect_hidden)
    if collect_hidden:
        hids, xs = outs                            # each (nb, B, S, Cp)
        x_final = xs[-1]
    else:
        x_final = outs

    if onecall:
        fh = x_final[:, -1, :]                     # (B, Cp)
    else:
        fh = x_final.reshape(B * S, Cp)
    logits = final_linear(fh, prepared)

    hidden_outputs = [xp[..., :C]]
    if collect_hidden:
        for i in range(len(prepared["dilations"])):
            hidden_outputs.append(hids[i, ..., :C])
            hidden_outputs.append(xs[i, ..., :C])
    return logits, hidden_outputs


# -------------------------------- pure-JAX reference ------------------------------ #

def reference_forward(x_ids, raw, kernel_size, dilations,
                      mxu_dtype=jnp.bfloat16, eps=1e-8):
    """Mirrors the kernel math (bf16 MXU inputs, f32 accumulation, E[h^2]-mean^2 LN)."""
    K = kernel_size
    x = raw["embedding"][x_ids]                    # (B, S, C) f32
    B, S, C = x.shape

    def conv(inp, w, b, dil):
        taps = []
        for k in range(K):
            shift = (K - 1 - k) * dil
            taps.append(jnp.pad(inp, ((0, 0), (shift, 0), (0, 0)))[:, :S, :])
        stacked = jnp.concatenate(taps, axis=-1).reshape(B * S, K * C)
        acc = jnp.dot(stacked.astype(mxu_dtype),
                      w.reshape(K * C, C).astype(mxu_dtype),
                      preferred_element_type=jnp.float32)
        return (acc + b).reshape(B, S, C)

    def lnrelu(h, g, be):
        mean = jnp.mean(h, axis=-1, keepdims=True)
        var = jnp.mean(h * h, axis=-1, keepdims=True) - mean * mean
        return jnp.maximum((h - mean) * lax.rsqrt(var + eps) * g + be, 0.0)

    hidden = [x]
    for blk, d in zip(raw["blocks"], dilations):
        w1, b1, g1, be1, w2, b2, g2, be2 = blk
        o1 = lnrelu(conv(x, w1, b1, d), g1, be1)
        o2 = lnrelu(conv(o1, w2, b2, 2 * d), g2, be2)
        x = o2 + x
        hidden.append(o1)
        hidden.append(x)
    fh = x.reshape(B * S, C)
    logits = jnp.dot(fh.astype(mxu_dtype), raw["final_w"].astype(mxu_dtype),
                     preferred_element_type=jnp.float32) + raw["final_b"]
    return logits, hidden


# --------------------------------------- main ------------------------------------- #

if __name__ == "__main__":
    ITEM_NUM = 64
    EMBED = HIDDEN = 32
    KERNEL_SIZE = 3
    DILATIONS = (1, 2)
    B, S = 2, 16

    key = jax.random.PRNGKey(0)
    k_param, k_ids = jax.random.split(key)
    raw = init_params(k_param, ITEM_NUM, EMBED, HIDDEN, KERNEL_SIZE, DILATIONS)
    prepared = prepare_params(raw, KERNEL_SIZE, DILATIONS)
    x_ids = jax.random.randint(k_ids, (B, S), 0, ITEM_NUM, dtype=jnp.int32)

    logits, hidden_outputs = nextitnet_forward(x_ids, prepared)
    logits = jax.block_until_ready(logits)

    ref_logits, ref_hidden = reference_forward(x_ids, raw, KERNEL_SIZE, DILATIONS)

    assert logits.shape == (B * S, ITEM_NUM)
    assert len(hidden_outputs) == 1 + 2 * len(DILATIONS)
    assert all(h.shape == (B, S, HIDDEN) for h in hidden_outputs)
    for got, want in zip(hidden_outputs, ref_hidden):
        assert jnp.allclose(got, want, rtol=2e-3, atol=2e-3), "hidden mismatch vs reference"
    assert jnp.allclose(logits, ref_logits, rtol=2e-3, atol=2e-3), "logits mismatch vs reference"

    print("KERNEL_OK")
</pallas_src>

<mosaic_0001>
module attributes {stable_mosaic.version = 11 : i64} {
  func.func @fused_blocks_kernel(%arg0: i32, %arg1: memref<1x16x128xf32, #tpu.memory_space<vmem>>, %arg2: memref<2x384x128xbf16, #tpu.memory_space<vmem>>, %arg3: memref<2x1x128xf32, #tpu.memory_space<vmem>>, %arg4: memref<2x1x128xf32, #tpu.memory_space<vmem>>, %arg5: memref<2x1x128xf32, #tpu.memory_space<vmem>>, %arg6: memref<2x384x128xbf16, #tpu.memory_space<vmem>>, %arg7: memref<2x1x128xf32, #tpu.memory_space<vmem>>, %arg8: memref<2x1x128xf32, #tpu.memory_space<vmem>>, %arg9: memref<2x1x128xf32, #tpu.memory_space<vmem>>, %arg10: memref<2x1x16x128xf32, #tpu.memory_space<vmem>>, %arg11: memref<2x1x16x128xf32, #tpu.memory_space<vmem>>, %arg12: memref<1x24x128xf32, #tpu.memory_space<vmem>>) attributes {dimension_semantics = [#tpu.dimension_semantics<parallel>], iteration_bounds = array<i64: 2>, scalar_prefetch = 0 : i64, scratch_operands = 1 : i64, tpu.core_type = #tpu.core_type<tc>, window_params = [{transform_indices = @transform_0, window_bounds = array<i64: 1, 16, 128>}, {pipeline_mode = #tpu.pipeline_mode<synchronous>, transform_indices = @transform_1, window_bounds = array<i64: 2, 384, 128>}, {pipeline_mode = #tpu.pipeline_mode<synchronous>, transform_indices = @transform_2, window_bounds = array<i64: 2, 1, 128>}, {pipeline_mode = #tpu.pipeline_mode<synchronous>, transform_indices = @transform_3, window_bounds = array<i64: 2, 1, 128>}, {pipeline_mode = #tpu.pipeline_mode<synchronous>, transform_indices = @transform_4, window_bounds = array<i64: 2, 1, 128>}, {pipeline_mode = #tpu.pipeline_mode<synchronous>, transform_indices = @transform_5, window_bounds = array<i64: 2, 384, 128>}, {pipeline_mode = #tpu.pipeline_mode<synchronous>, transform_indices = @transform_6, window_bounds = array<i64: 2, 1, 128>}, {pipeline_mode = #tpu.pipeline_mode<synchronous>, transform_indices = @transform_7, window_bounds = array<i64: 2, 1, 128>}, {pipeline_mode = #tpu.pipeline_mode<synchronous>, transform_indices = @transform_8, window_bounds = array<i64: 2, 1, 128>}, {transform_indices = @transform_9, window_bounds = array<i64: 2, 1, 16, 128>}, {transform_indices = @transform_10, window_bounds = array<i64: 2, 1, 16, 128>}]} {
    %c0 = arith.constant 0 : index
    %c0_0 = arith.constant 0 : index
    %c0_1 = arith.constant 0 : index
    %0 = vector.load %arg1[%c0, %c0_0, %c0_1] : memref<1x16x128xf32, #tpu.memory_space<vmem>>, vector<1x16x128xf32>
    %cst = arith.constant 0.000000e+00 : f32
    %1 = vector.broadcast %cst : f32 to vector<1x8x128xf32>
    %c0_2 = arith.constant 0 : index
    %c0_3 = arith.constant 0 : index
    %c0_4 = arith.constant 0 : index
    %2 = vector.load %arg12[%c0_2, %c0_3, %c0_4] : memref<1x24x128xf32, #tpu.memory_space<vmem>>, vector<1x8x128xf32>
    tpu.vector_store %arg12[%c0_2, %c0_3, %c0_4], %1 {strides = array<i32>} : memref<1x24x128xf32, #tpu.memory_space<vmem>>, vector<1x8x128xf32>,
    %c0_5 = arith.constant 0 : index
    %c0_6 = arith.constant 0 : index
    %c0_7 = arith.constant 0 : index
    %3 = vector.load %arg2[%c0_5, %c0_6, %c0_7] : memref<2x384x128xbf16, #tpu.memory_space<vmem>>, vector<1x384x128xbf16>
    %4 = vector.shape_cast %3 : vector<1x384x128xbf16> to vector<384x128xbf16>
    %c0_8 = arith.constant 0 : index
    %c0_9 = arith.constant 0 : index
    %c0_10 = arith.constant 0 : index
    %5 = vector.load %arg3[%c0_8, %c0_9, %c0_10] : memref<2x1x128xf32, #tpu.memory_space<vmem>>, vector<1x1x128xf32>
    %6 = vector.shape_cast %5 : vector<1x1x128xf32> to vector<1x128xf32>
    %c0_11 = arith.constant 0 : index
    %c8 = arith.constant 8 : index
    %c0_12 = arith.constant 0 : index
    %7 = vector.load %arg12[%c0_11, %c8, %c0_12] : memref<1x24x128xf32, #tpu.memory_space<vmem>>, vector<1x16x128xf32>
    tpu.vector_store %arg12[%c0_11, %c8, %c0_12], %0 {strides = array<i32>} : memref<1x24x128xf32, #tpu.memory_space<vmem>>, vector<1x16x128xf32>,
    %c0_13 = arith.constant 0 : index
    %c6 = arith.constant 6 : index
    %c0_14 = arith.constant 0 : index
    %8 = vector.load %arg12[%c0_13, %c6, %c0_14] : memref<1x24x128xf32, #tpu.memory_space<vmem>>, vector<1x16x128xf32>
    %c0_15 = arith.constant 0 : index
    %c7 = arith.constant 7 : index
    %c0_16 = arith.constant 0 : index
    %9 = vector.load %arg12[%c0_15, %c7, %c0_16] : memref<1x24x128xf32, #tpu.memory_space<vmem>>, vector<1x16x128xf32>
    %c0_17 = arith.constant 0 : index
    %c8_18 = arith.constant 8 : index
    %c0_19 = arith.constant 0 : index
    %10 = vector.load %arg12[%c0_17, %c8_18, %c0_19] : memref<1x24x128xf32, #tpu.memory_space<vmem>>, vector<1x16x128xf32>
    %11 = tpu.concatenate %8, %9, %10 in 2 : vector<1x16x128xf32>, vector<1x16x128xf32>, vector<1x16x128xf32> -> vector<1x16x384xf32>
    %12 = vector.shape_cast %11 : vector<1x16x384xf32> to vector<16x384xf32>
    %13 = arith.truncf %12 : vector<16x384xf32> to vector<16x384xbf16>
    %cst_20 = arith.constant dense<0.000000e+00> : vector<16x128xf32>
    %14 = tpu.matmul %13, %4, %cst_20 {dimension_numbers = #tpu.dot_dimension_numbers<[1], [0], [0], [1], [0, 0, 1, 1], [], []>} : vector<16x384xbf16>, vector<384x128xbf16>, vector<16x128xf32> -> vector<16x128xf32>
    %15 = vector.broadcast %6 : vector<1x128xf32> to vector<16x128xf32>
    %16 = arith.addf %14, %15 : vector<16x128xf32>
    %c0_21 = arith.constant 0 : index
    %c0_22 = arith.constant 0 : index
    %c0_23 = arith.constant 0 : index
    %17 = vector.load %arg4[%c0_21, %c0_22, %c0_23] : memref<2x1x128xf32, #tpu.memory_space<vmem>>, vector<1x1x128xf32>
    %18 = vector.shape_cast %17 : vector<1x1x128xf32> to vector<1x128xf32>
    %c0_24 = arith.constant 0 : index
    %c0_25 = arith.constant 0 : index
    %c0_26 = arith.constant 0 : index
    %19 = vector.load %arg5[%c0_24, %c0_25, %c0_26] : memref<2x1x128xf32, #tpu.memory_space<vmem>>, vector<1x1x128xf32>
    %20 = vector.shape_cast %19 : vector<1x1x128xf32> to vector<1x128xf32>
    %cst_27 = arith.constant dense<0.000000e+00> : vector<16xf32>
    %21 = vector.multi_reduction <add>, %16, %cst_27 [1] : vector<16x128xf32> to vector<16xf32>
    %22 = vector.shape_cast %21 : vector<16xf32> to vector<16x1xf32>
    %cst_28 = arith.constant 3.125000e-02 : f32
    %23 = vector.broadcast %cst_28 : f32 to vector<16x1xf32>
    %24 = arith.mulf %22, %23 : vector<16x1xf32>
    %25 = arith.mulf %16, %16 : vector<16x128xf32>
    %cst_29 = arith.constant dense<0.000000e+00> : vector<16xf32>
    %26 = vector.multi_reduction <add>, %25, %cst_29 [1] : vector<16x128xf32> to vector<16xf32>
    %27 = vector.shape_cast %26 : vector<16xf32> to vector<16x1xf32>
    %cst_30 = arith.constant 3.125000e-02 : f32
    %28 = vector.broadcast %cst_30 : f32 to vector<16x1xf32>
    %29 = arith.mulf %27, %28 : vector<16x1xf32>
    %30 = arith.mulf %24, %24 : vector<16x1xf32>
    %31 = arith.subf %29, %30 : vector<16x1xf32>
    %32 = vector.broadcast %24 : vector<16x1xf32> to vector<16x128xf32>
    %33 = arith.subf %16, %32 : vector<16x128xf32>
    %cst_31 = arith.constant 9.99999993E-9 : f32
    %34 = vector.broadcast %cst_31 : f32 to vector<16x1xf32>
    %35 = arith.addf %31, %34 : vector<16x1xf32>
    %36 = math.rsqrt %35 : vector<16x1xf32>
    %37 = vector.broadcast %36 : vector<16x1xf32> to vector<16x128xf32>
    %38 = arith.mulf %33, %37 : vector<16x128xf32>
    %39 = vector.broadcast %18 : vector<1x128xf32> to vector<16x128xf32>
    %40 = arith.mulf %38, %39 : vector<16x128xf32>
    %41 = vector.broadcast %20 : vector<1x128xf32> to vector<16x128xf32>
    %42 = arith.addf %40, %41 : vector<16x128xf32>
    %cst_32 = arith.constant 0.000000e+00 : f32
    %43 = vector.broadcast %cst_32 : f32 to vector<16x128xf32>
    %44 = arith.maximumf %42, %43 : vector<16x128xf32>
    %45 = vector.shape_cast %44 : vector<16x128xf32> to vector<1x16x128xf32>
    %c0_33 = arith.constant 0 : index
    %c0_34 = arith.constant 0 : index
    %c0_35 = arith.constant 0 : index
    %46 = vector.load %arg6[%c0_33, %c0_34, %c0_35] : memref<2x384x128xbf16, #tpu.memory_space<vmem>>, vector<1x384x128xbf16>
    %47 = vector.shape_cast %46 : vector<1x384x128xbf16> to vector<384x128xbf16>
    %c0_36 = arith.constant 0 : index
    %c0_37 = arith.constant 0 : index
    %c0_38 = arith.constant 0 : index
    %48 = vector.load %arg7[%c0_36, %c0_37, %c0_38] : memref<2x1x128xf32, #tpu.memory_space<vmem>>, vector<1x1x128xf32>
    %49 = vector.shape_cast %48 : vector<1x1x128xf32> to vector<1x128xf32>
    %c0_39 = arith.constant 0 : index
    %c8_40 = arith.constant 8 : index
    %c0_41 = arith.constant 0 : index
    %50 = vector.load %arg12[%c0_39, %c8_40, %c0_41] : memref<1x24x128xf32, #tpu.memory_space<vmem>>, vector<1x16x128xf32>
    tpu.vector_store %arg12[%c0_39, %c8_40, %c0_41], %45 {strides = array<i32>} : memref<1x24x128xf32, #tpu.memory_space<vmem>>, vector<1x16x128xf32>,
    %c0_42 = arith.constant 0 : index
    %c4 = arith.constant 4 : index
    %c0_43 = arith.constant 0 : index
    %51 = vector.load %arg12[%c0_42, %c4, %c0_43] : memref<1x24x128xf32, #tpu.memory_space<vmem>>, vector<1x16x128xf32>
    %c0_44 = arith.constant 0 : index
    %c6_45 = arith.constant 6 : index
    %c0_46 = arith.constant 0 : index
    %52 = vector.load %arg12[%c0_44, %c6_45, %c0_46] : memref<1x24x128xf32, #tpu.memory_space<vmem>>, vector<1x16x128xf32>
    %c0_47 = arith.constant 0 : index
    %c8_48 = arith.constant 8 : index
    %c0_49 = arith.constant 0 : index
    %53 = vector.load %arg12[%c0_47, %c8_48, %c0_49] : memref<1x24x128xf32, #tpu.memory_space<vmem>>, vector<1x16x128xf32>
    %54 = tpu.concatenate %51, %52, %53 in 2 : vector<1x16x128xf32>, vector<1x16x128xf32>, vector<1x16x128xf32> -> vector<1x16x384xf32>
    %55 = vector.shape_cast %54 : vector<1x16x384xf32> to vector<16x384xf32>
    %56 = arith.truncf %55 : vector<16x384xf32> to vector<16x384xbf16>
    %cst_50 = arith.constant dense<0.000000e+00> : vector<16x128xf32>
    %57 = tpu.matmul %56, %47, %cst_50 {dimension_numbers = #tpu.dot_dimension_numbers<[1], [0], [0], [1], [0, 0, 1, 1], [], []>} : vector<16x384xbf16>, vector<384x128xbf16>, vector<16x128xf32> -> vector<16x128xf32>
    %58 = vector.broadcast %49 : vector<1x128xf32> to vector<16x128xf32>
    %59 = arith.addf %57, %58 : vector<16x128xf32>
    %c0_51 = arith.constant 0 : index
    %c0_52 = arith.constant 0 : index
    %c0_53 = arith.constant 0 : index
    %60 = vector.load %arg8[%c0_51, %c0_52, %c0_53] : memref<2x1x128xf32, #tpu.memory_space<vmem>>, vector<1x1x128xf32>
    %61 = vector.shape_cast %60 : vector<1x1x128xf32> to vector<1x128xf32>
    %c0_54 = arith.constant 0 : index
    %c0_55 = arith.constant 0 : index
    %c0_56 = arith.constant 0 : index
    %62 = vector.load %arg9[%c0_54, %c0_55, %c0_56] : memref<2x1x128xf32, #tpu.memory_space<vmem>>, vector<1x1x128xf32>
    %63 = vector.shape_cast %62 : vector<1x1x128xf32> to vector<1x128xf32>
    %cst_57 = arith.constant dense<0.000000e+00> : vector<16xf32>
    %64 = vector.multi_reduction <add>, %59, %cst_57 [1] : vector<16x128xf32> to vector<16xf32>
    %65 = vector.shape_cast %64 : vector<16xf32> to vector<16x1xf32>
    %cst_58 = arith.constant 3.125000e-02 : f32
    %66 = vector.broadcast %cst_58 : f32 to vector<16x1xf32>
    %67 = arith.mulf %65, %66 : vector<16x1xf32>
    %68 = arith.mulf %59, %59 : vector<16x128xf32>
    %cst_59 = arith.constant dense<0.000000e+00> : vector<16xf32>
    %69 = vector.multi_reduction <add>, %68, %cst_59 [1] : vector<16x128xf32> to vector<16xf32>
    %70 = vector.shape_cast %69 : vector<16xf32> to vector<16x1xf32>
    %cst_60 = arith.constant 3.125000e-02 : f32
    %71 = vector.broadcast %cst_60 : f32 to vector<16x1xf32>
    %72 = arith.mulf %70, %71 : vector<16x1xf32>
    %73 = arith.mulf %67, %67 : vector<16x1xf32>
    %74 = arith.subf %72, %73 : vector<16x1xf32>
    %75 = vector.broadcast %67 : vector<16x1xf32> to vector<16x128xf32>
    %76 = arith.subf %59, %75 : vector<16x128xf32>
    %cst_61 = arith.constant 9.99999993E-9 : f32
    %77 = vector.broadcast %cst_61 : f32 to vector<16x1xf32>
    %78 = arith.addf %74, %77 : vector<16x1xf32>
    %79 = math.rsqrt %78 : vector<16x1xf32>
    %80 = vector.broadcast %79 : vector<16x1xf32> to vector<16x128xf32>
    %81 = arith.mulf %76, %80 : vector<16x128xf32>
    %82 = vector.broadcast %61 : vector<1x128xf32> to vector<16x128xf32>
    %83 = arith.mulf %81, %82 : vector<16x128xf32>
    %84 = vector.broadcast %63 : vector<1x128xf32> to vector<16x128xf32>
    %85 = arith.addf %83, %84 : vector<16x128xf32>
    %cst_62 = arith.constant 0.000000e+00 : f32
    %86 = vector.broadcast %cst_62 : f32 to vector<16x128xf32>
    %87 = arith.maximumf %85, %86 : vector<16x128xf32>
    %88 = vector.shape_cast %87 : vector<16x128xf32> to vector<1x16x128xf32>
    %89 = arith.addf %0, %88 : vector<1x16x128xf32>
    %c0_63 = arith.constant 0 : index
    %c0_64 = arith.constant 0 : index
    %c0_65 = arith.constant 0 : index
    %c0_66 = arith.constant 0 : index
    %90 = vector.load %arg10[%c0_63, %c0_64, %c0_65, %c0_66] : memref<2x1x16x128xf32, #tpu.memory_space<vmem>>, vector<1x1x16x128xf32>
    %91 = vector.shape_cast %90 : vector<1x1x16x128xf32> to vector<1x16x128xf32>
    %92 = vector.shape_cast %45 : vector<1x16x128xf32> to vector<1x1x16x128xf32>
    tpu.vector_store %arg10[%c0_63, %c0_64, %c0_65, %c0_66], %92 {strides = array<i32>} : memref<2x1x16x128xf32, #tpu.memory_space<vmem>>, vector<1x1x16x128xf32>,
    %c0_67 = arith.constant 0 : index
    %c0_68 = arith.constant 0 : index
    %c0_69 = arith.constant 0 : index
    %c0_70 = arith.constant 0 : index
    %93 = vector.load %arg11[%c0_67, %c0_68, %c0_69, %c0_70] : memref<2x1x16x128xf32, #tpu.memory_space<vmem>>, vector<1x1x16x128xf32>
    %94 = vector.shape_cast %93 : vector<1x1x16x128xf32> to vector<1x16x128xf32>
    %95 = vector.shape_cast %89 : vector<1x16x128xf32> to vector<1x1x16x128xf32>
    tpu.vector_store %arg11[%c0_67, %c0_68, %c0_69, %c0_70], %95 {strides = array<i32>} : memref<2x1x16x128xf32, #tpu.memory_space<vmem>>, vector<1x1x16x128xf32>,
    %c1 = arith.constant 1 : index
    %c0_71 = arith.constant 0 : index
    %c0_72 = arith.constant 0 : index
    %96 = vector.load %arg2[%c1, %c0_71, %c0_72] : memref<2x384x128xbf16, #tpu.memory_space<vmem>>, vector<1x384x128xbf16>
    %97 = vector.shape_cast %96 : vector<1x384x128xbf16> to vector<384x128xbf16>
    %c1_73 = arith.constant 1 : index
    %c0_74 = arith.constant 0 : index
    %c0_75 = arith.constant 0 : index
    %98 = vector.load %arg3[%c1_73, %c0_74, %c0_75] : memref<2x1x128xf32, #tpu.memory_space<vmem>>, vector<1x1x128xf32>
    %99 = vector.shape_cast %98 : vector<1x1x128xf32> to vector<1x128xf32>
    %c0_76 = arith.constant 0 : index
    %c8_77 = arith.constant 8 : index
    %c0_78 = arith.constant 0 : index
    %100 = vector.load %arg12[%c0_76, %c8_77, %c0_78] : memref<1x24x128xf32, #tpu.memory_space<vmem>>, vector<1x16x128xf32>
    tpu.vector_store %arg12[%c0_76, %c8_77, %c0_78], %89 {strides = array<i32>} : memref<1x24x128xf32, #tpu.memory_space<vmem>>, vector<1x16x128xf32>,
    %c0_79 = arith.constant 0 : index
    %c4_80 = arith.constant 4 : index
    %c0_81 = arith.constant 0 : index
    %101 = vector.load %arg12[%c0_79, %c4_80, %c0_81] : memref<1x24x128xf32, #tpu.memory_space<vmem>>, vector<1x16x128xf32>
    %c0_82 = arith.constant 0 : index
    %c6_83 = arith.constant 6 : index
    %c0_84 = arith.constant 0 : index
    %102 = vector.load %arg12[%c0_82, %c6_83, %c0_84] : memref<1x24x128xf32, #tpu.memory_space<vmem>>, vector<1x16x128xf32>
    %c0_85 = arith.constant 0 : index
    %c8_86 = arith.constant 8 : index
    %c0_87 = arith.constant 0 : index
    %103 = vector.load %arg12[%c0_85, %c8_86, %c0_87] : memref<1x24x128xf32, #tpu.memory_space<vmem>>, vector<1x16x128xf32>
    %104 = tpu.concatenate %101, %102, %103 in 2 : vector<1x16x128xf32>, vector<1x16x128xf32>, vector<1x16x128xf32> -> vector<1x16x384xf32>
    %105 = vector.shape_cast %104 : vector<1x16x384xf32> to vector<16x384xf32>
    %106 = arith.truncf %105 : vector<16x384xf32> to vector<16x384xbf16>
    %cst_88 = arith.constant dense<0.000000e+00> : vector<16x128xf32>
    %107 = tpu.matmul %106, %97, %cst_88 {dimension_numbers = #tpu.dot_dimension_numbers<[1], [0], [0], [1], [0, 0, 1, 1], [], []>} : vector<16x384xbf16>, vector<384x128xbf16>, vector<16x128xf32> -> vector<16x128xf32>
    %108 = vector.broadcast %99 : vector<1x128xf32> to vector<16x128xf32>
    %109 = arith.addf %107, %108 : vector<16x128xf32>
    %c1_89 = arith.constant 1 : index
    %c0_90 = arith.constant 0 : index
    %c0_91 = arith.constant 0 : index
    %110 = vector.load %arg4[%c1_89, %c0_90, %c0_91] : memref<2x1x128xf32, #tpu.memory_space<vmem>>, vector<1x1x128xf32>
    %111 = vector.shape_cast %110 : vector<1x1x128xf32> to vector<1x128xf32>
    %c1_92 = arith.constant 1 : index
    %c0_93 = arith.constant 0 : index
    %c0_94 = arith.constant 0 : index
    %112 = vector.load %arg5[%c1_92, %c0_93, %c0_94] : memref<2x1x128xf32, #tpu.memory_space<vmem>>, vector<1x1x128xf32>
    %113 = vector.shape_cast %112 : vector<1x1x128xf32> to vector<1x128xf32>
    %cst_95 = arith.constant dense<0.000000e+00> : vector<16xf32>
    %114 = vector.multi_reduction <add>, %109, %cst_95 [1] : vector<16x128xf32> to vector<16xf32>
    %115 = vector.shape_cast %114 : vector<16xf32> to vector<16x1xf32>
    %cst_96 = arith.constant 3.125000e-02 : f32
    %116 = vector.broadcast %cst_96 : f32 to vector<16x1xf32>
    %117 = arith.mulf %115, %116 : vector<16x1xf32>
    %118 = arith.mulf %109, %109 : vector<16x128xf32>
    %cst_97 = arith.constant dense<0.000000e+00> : vector<16xf32>
    %119 = vector.multi_reduction <add>, %118, %cst_97 [1] : vector<16x128xf32> to vector<16xf32>
    %120 = vector.shape_cast %119 : vector<16xf32> to vector<16x1xf32>
    %cst_98 = arith.constant 3.125000e-02 : f32
    %121 = vector.broadcast %cst_98 : f32 to vector<16x1xf32>
    %122 = arith.mulf %120, %121 : vector<16x1xf32>
    %123 = arith.mulf %117, %117 : vector<16x1xf32>
    %124 = arith.subf %122, %123 : vector<16x1xf32>
    %125 = vector.broadcast %117 : vector<16x1xf32> to vector<16x128xf32>
    %126 = arith.subf %109, %125 : vector<16x128xf32>
    %cst_99 = arith.constant 9.99999993E-9 : f32
    %127 = vector.broadcast %cst_99 : f32 to vector<16x1xf32>
    %128 = arith.addf %124, %127 : vector<16x1xf32>
    %129 = math.rsqrt %128 : vector<16x1xf32>
    %130 = vector.broadcast %129 : vector<16x1xf32> to vector<16x128xf32>
    %131 = arith.mulf %126, %130 : vector<16x128xf32>
    %132 = vector.broadcast %111 : vector<1x128xf32> to vector<16x128xf32>
    %133 = arith.mulf %131, %132 : vector<16x128xf32>
    %134 = vector.broadcast %113 : vector<1x128xf32> to vector<16x128xf32>
    %135 = arith.addf %133, %134 : vector<16x128xf32>
    %cst_100 = arith.constant 0.000000e+00 : f32
    %136 = vector.broadcast %cst_100 : f32 to vector<16x128xf32>
    %137 = arith.maximumf %135, %136 : vector<16x128xf32>
    %138 = vector.shape_cast %137 : vector<16x128xf32> to vector<1x16x128xf32>
    %c1_101 = arith.constant 1 : index
    %c0_102 = arith.constant 0 : index
    %c0_103 = arith.constant 0 : index
    %139 = vector.load %arg6[%c1_101, %c0_102, %c0_103] : memref<2x384x128xbf16, #tpu.memory_space<vmem>>, vector<1x384x128xbf16>
    %140 = vector.shape_cast %139 : vector<1x384x128xbf16> to vector<384x128xbf16>
    %c1_104 = arith.constant 1 : index
    %c0_105 = arith.constant 0 : index
    %c0_106 = arith.constant 0 : index
    %141 = vector.load %arg7[%c1_104, %c0_105, %c0_106] : memref<2x1x128xf32, #tpu.memory_space<vmem>>, vector<1x1x128xf32>
    %142 = vector.shape_cast %141 : vector<1x1x128xf32> to vector<1x128xf32>
    %c0_107 = arith.constant 0 : index
    %c8_108 = arith.constant 8 : index
    %c0_109 = arith.constant 0 : index
    %143 = vector.load %arg12[%c0_107, %c8_108, %c0_109] : memref<1x24x128xf32, #tpu.memory_space<vmem>>, vector<1x16x128xf32>
    tpu.vector_store %arg12[%c0_107, %c8_108, %c0_109], %138 {strides = array<i32>} : memref<1x24x128xf32, #tpu.memory_space<vmem>>, vector<1x16x128xf32>,
    %c0_110 = arith.constant 0 : index
    %c0_111 = arith.constant 0 : index
    %c0_112 = arith.constant 0 : index
    %144 = vector.load %arg12[%c0_110, %c0_111, %c0_112] : memref<1x24x128xf32, #tpu.memory_space<vmem>>, vector<1x16x128xf32>
    %c0_113 = arith.constant 0 : index
    %c4_114 = arith.constant 4 : index
    %c0_115 = arith.constant 0 : index
    %145 = vector.load %arg12[%c0_113, %c4_114, %c0_115] : memref<1x24x128xf32, #tpu.memory_space<vmem>>, vector<1x16x128xf32>
    %c0_116 = arith.constant 0 : index
    %c8_117 = arith.constant 8 : index
    %c0_118 = arith.constant 0 : index
    %146 = vector.load %arg12[%c0_116, %c8_117, %c0_118] : memref<1x24x128xf32, #tpu.memory_space<vmem>>, vector<1x16x128xf32>
    %147 = tpu.concatenate %144, %145, %146 in 2 : vector<1x16x128xf32>, vector<1x16x128xf32>, vector<1x16x128xf32> -> vector<1x16x384xf32>
    %148 = vector.shape_cast %147 : vector<1x16x384xf32> to vector<16x384xf32>
    %149 = arith.truncf %148 : vector<16x384xf32> to vector<16x384xbf16>
    %cst_119 = arith.constant dense<0.000000e+00> : vector<16x128xf32>
    %150 = tpu.matmul %149, %140, %cst_119 {dimension_numbers = #tpu.dot_dimension_numbers<[1], [0], [0], [1], [0, 0, 1, 1], [], []>} : vector<16x384xbf16>, vector<384x128xbf16>, vector<16x128xf32> -> vector<16x128xf32>
    %151 = vector.broadcast %142 : vector<1x128xf32> to vector<16x128xf32>
    %152 = arith.addf %150, %151 : vector<16x128xf32>
    %c1_120 = arith.constant 1 : index
    %c0_121 = arith.constant 0 : index
    %c0_122 = arith.constant 0 : index
    %153 = vector.load %arg8[%c1_120, %c0_121, %c0_122] : memref<2x1x128xf32, #tpu.memory_space<vmem>>, vector<1x1x128xf32>
    %154 = vector.shape_cast %153 : vector<1x1x128xf32> to vector<1x128xf32>
    %c1_123 = arith.constant 1 : index
    %c0_124 = arith.constant 0 : index
    %c0_125 = arith.constant 0 : index
    %155 = vector.load %arg9[%c1_123, %c0_124, %c0_125] : memref<2x1x128xf32, #tpu.memory_space<vmem>>, vector<1x1x128xf32>
    %156 = vector.shape_cast %155 : vector<1x1x128xf32> to vector<1x128xf32>
    %cst_126 = arith.constant dense<0.000000e+00> : vector<16xf32>
    %157 = vector.multi_reduction <add>, %152, %cst_126 [1] : vector<16x128xf32> to vector<16xf32>
    %158 = vector.shape_cast %157 : vector<16xf32> to vector<16x1xf32>
    %cst_127 = arith.constant 3.125000e-02 : f32
    %159 = vector.broadcast %cst_127 : f32 to vector<16x1xf32>
    %160 = arith.mulf %158, %159 : vector<16x1xf32>
    %161 = arith.mulf %152, %152 : vector<16x128xf32>
    %cst_128 = arith.constant dense<0.000000e+00> : vector<16xf32>
    %162 = vector.multi_reduction <add>, %161, %cst_128 [1] : vector<16x128xf32> to vector<16xf32>
    %163 = vector.shape_cast %162 : vector<16xf32> to vector<16x1xf32>
    %cst_129 = arith.constant 3.125000e-02 : f32
    %164 = vector.broadcast %cst_129 : f32 to vector<16x1xf32>
    %165 = arith.mulf %163, %164 : vector<16x1xf32>
    %166 = arith.mulf %160, %160 : vector<16x1xf32>
    %167 = arith.subf %165, %166 : vector<16x1xf32>
    %168 = vector.broadcast %160 : vector<16x1xf32> to vector<16x128xf32>
    %169 = arith.subf %152, %168 : vector<16x128xf32>
    %cst_130 = arith.constant 9.99999993E-9 : f32
    %170 = vector.broadcast %cst_130 : f32 to vector<16x1xf32>
    %171 = arith.addf %167, %170 : vector<16x1xf32>
    %172 = math.rsqrt %171 : vector<16x1xf32>
    %173 = vector.broadcast %172 : vector<16x1xf32> to vector<16x128xf32>
    %174 = arith.mulf %169, %173 : vector<16x128xf32>
    %175 = vector.broadcast %154 : vector<1x128xf32> to vector<16x128xf32>
    %176 = arith.mulf %174, %175 : vector<16x128xf32>
    %177 = vector.broadcast %156 : vector<1x128xf32> to vector<16x128xf32>
    %178 = arith.addf %176, %177 : vector<16x128xf32>
    %cst_131 = arith.constant 0.000000e+00 : f32
    %179 = vector.broadcast %cst_131 : f32 to vector<16x128xf32>
    %180 = arith.maximumf %178, %179 : vector<16x128xf32>
    %181 = vector.shape_cast %180 : vector<16x128xf32> to vector<1x16x128xf32>
    %182 = arith.addf %89, %181 : vector<1x16x128xf32>
    %c1_132 = arith.constant 1 : index
    %c0_133 = arith.constant 0 : index
    %c0_134 = arith.constant 0 : index
    %c0_135 = arith.constant 0 : index
    %183 = vector.load %arg10[%c1_132, %c0_133, %c0_134, %c0_135] : memref<2x1x16x128xf32, #tpu.memory_space<vmem>>, vector<1x1x16x128xf32>
    %184 = vector.shape_cast %183 : vector<1x1x16x128xf32> to vector<1x16x128xf32>
    %185 = vector.shape_cast %138 : vector<1x16x128xf32> to vector<1x1x16x128xf32>
    tpu.vector_store %arg10[%c1_132, %c0_133, %c0_134, %c0_135], %185 {strides = array<i32>} : memref<2x1x16x128xf32, #tpu.memory_space<vmem>>, vector<1x1x16x128xf32>,
    %c1_136 = arith.constant 1 : index
    %c0_137 = arith.constant 0 : index
    %c0_138 = arith.constant 0 : index
    %c0_139 = arith.constant 0 : index
    %186 = vector.load %arg11[%c1_136, %c0_137, %c0_138, %c0_139] : memref<2x1x16x128xf32, #tpu.memory_space<vmem>>, vector<1x1x16x128xf32>
    %187 = vector.shape_cast %186 : vector<1x1x16x128xf32> to vector<1x16x128xf32>
    %188 = vector.shape_cast %182 : vector<1x16x128xf32> to vector<1x1x16x128xf32>
    tpu.vector_store %arg11[%c1_136, %c0_137, %c0_138, %c0_139], %188 {strides = array<i32>} : memref<2x1x16x128xf32, #tpu.memory_space<vmem>>, vector<1x1x16x128xf32>,
    return
  }
  func.func @transform_0(%arg0: i32) -> (i32, i32, i32) {
    %c0_i32 = arith.constant 0 : i32
    %c0_i32_0 = arith.constant 0 : i32
    %c0_i32_1 = arith.constant 0 : i32
    return %arg0, %c0_i32, %c0_i32_0 : i32, i32, i32
  }
  func.func @transform_1(%arg0: i32) -> (i32, i32, i32) {
    %c0_i32 = arith.constant 0 : i32
    %c0_i32_0 = arith.constant 0 : i32
    %c0_i32_1 = arith.constant 0 : i32
    %c0_i32_2 = arith.constant 0 : i32
    return %c0_i32, %c0_i32_0, %c0_i32_1 : i32, i32, i32
  }
  func.func @transform_2(%arg0: i32) -> (i32, i32, i32) {
    %c0_i32 = arith.constant 0 : i32
    %c0_i32_0 = arith.constant 0 : i32
    %c0_i32_1 = arith.constant 0 : i32
    %c0_i32_2 = arith.constant 0 : i32
    return %c0_i32, %c0_i32_0, %c0_i32_1 : i32, i32, i32
  }
  func.func @transform_3(%arg0: i32) -> (i32, i32, i32) {
    %c0_i32 = arith.constant 0 : i32
    %c0_i32_0 = arith.constant 0 : i32
    %c0_i32_1 = arith.constant 0 : i32
    %c0_i32_2 = arith.constant 0 : i32
    return %c0_i32, %c0_i32_0, %c0_i32_1 : i32, i32, i32
  }
  func.func @transform_4(%arg0: i32) -> (i32, i32, i32) {
    %c0_i32 = arith.constant 0 : i32
    %c0_i32_0 = arith.constant 0 : i32
    %c0_i32_1 = arith.constant 0 : i32
    %c0_i32_2 = arith.constant 0 : i32
    return %c0_i32, %c0_i32_0, %c0_i32_1 : i32, i32, i32
  }
  func.func @transform_5(%arg0: i32) -> (i32, i32, i32) {
    %c0_i32 = arith.constant 0 : i32
    %c0_i32_0 = arith.constant 0 : i32
    %c0_i32_1 = arith.constant 0 : i32
    %c0_i32_2 = arith.constant 0 : i32
    return %c0_i32, %c0_i32_0, %c0_i32_1 : i32, i32, i32
  }
  func.func @transform_6(%arg0: i32) -> (i32, i32, i32) {
    %c0_i32 = arith.constant 0 : i32
    %c0_i32_0 = arith.constant 0 : i32
    %c0_i32_1 = arith.constant 0 : i32
    %c0_i32_2 = arith.constant 0 : i32
    return %c0_i32, %c0_i32_0, %c0_i32_1 : i32, i32, i32
  }
  func.func @transform_7(%arg0: i32) -> (i32, i32, i32) {
    %c0_i32 = arith.constant 0 : i32
    %c0_i32_0 = arith.constant 0 : i32
    %c0_i32_1 = arith.constant 0 : i32
    %c0_i32_2 = arith.constant 0 : i32
    return %c0_i32, %c0_i32_0, %c0_i32_1 : i32, i32, i32
  }
  func.func @transform_8(%arg0: i32) -> (i32, i32, i32) {
    %c0_i32 = arith.constant 0 : i32
    %c0_i32_0 = arith.constant 0 : i32
    %c0_i32_1 = arith.constant 0 : i32
    %c0_i32_2 = arith.constant 0 : i32
    return %c0_i32, %c0_i32_0, %c0_i32_1 : i32, i32, i32
  }
  func.func @transform_9(%arg0: i32) -> (i32, i32, i32, i32) {
    %c0_i32 = arith.constant 0 : i32
    %c0_i32_0 = arith.constant 0 : i32
    %c0_i32_1 = arith.constant 0 : i32
    %c0_i32_2 = arith.constant 0 : i32
    return %c0_i32, %arg0, %c0_i32_0, %c0_i32_1 : i32, i32, i32, i32
  }
  func.func @transform_10(%arg0: i32) -> (i32, i32, i32, i32) {
    %c0_i32 = arith.constant 0 : i32
    %c0_i32_0 = arith.constant 0 : i32
    %c0_i32_1 = arith.constant 0 : i32
    %c0_i32_2 = arith.constant 0 : i32
    return %c0_i32, %arg0, %c0_i32_0, %c0_i32_1 : i32, i32, i32, i32
  }
}

</mosaic_0001>

<bundles_post_ra>
// kernel: tpu_custom_call.1
= control target key start
LH: loop header
LB: loop body
LE: loop exit
PB: predicated region body
PF: predicated region fallthrough
CT: control target
= control target key end

     0   :  { %16 = vsyncpa [#allocation4], 0  ;;  %s3191_s0 = inlined_call_operand.hbm [shape: f32[2,16,128], index: 0, kind: input, shape index: {}]   ;;  %s3192_s1 = inlined_call_operand.hbm [shape: bf16[2,384,128], index: 1, kind: input, shape index: {}]   ;;  %s3193_s2 = inlined_call_operand.vmem [shape: f32[2,1,128], index: 2, kind: input, shape index: {}]   ;;  %s3194_s3 = inlined_call_operand.vmem [shape: f32[2,1,128], index: 3, kind: input, shape index: {}]   ;;  %s3195_s4 = inlined_call_operand.vmem [shape: f32[2,1,128], index: 4, kind: input, shape index: {}]   ;;  %s3196_s5 = inlined_call_operand.hbm [shape: bf16[2,384,128], index: 5, kind: input, shape index: {}]   ;;  %s3197_s6 = inlined_call_operand.vmem [shape: f32[2,1,128], index: 6, kind: input, shape index: {}]   ;;  %s3198_s7 = inlined_call_operand.vmem [shape: f32[2,1,128], index: 7, kind: input, shape index: {}]   ;;  %s3199_s8 = inlined_call_operand.vmem [shape: f32[2,1,128], index: 8, kind: input, shape index: {}]   ;;  %s3200_s9 = inlined_call_operand.hbm [shape: f32[2,2,16,128], index: 9, kind: output, shape index: {0}]   ;;  %s3201_s10 = inlined_call_operand.hbm [shape: f32[2,2,16,128], index: 10, kind: output, shape index: {1}]  }
   0x1   :  { %18 = vsyncpa [#allocation4 + $0x1], 0 }
   0x2   :  { %19 = vsyncpa [#allocation7], 0 }
   0x3   :  { %20 = vsyncpa [#allocation5], 0 }
   0x4   :  { %22 = vsyncpa [#allocation5 + $0x1], 0 }
   0x5   :  { %23 = vsyncpa [#allocation11], 0 }
   0x6   :  { %25 = vsyncpa [#allocation11 + $0x1], 0  ;;  %s2789_s13 = smov 0   ;;  %s2791_s14 = smov 0  }
   0x7   :  { %s2793_s15 = smov 0   ;;  %s2795_s16 = smov 0  }
   0x8 LB: > { %3207 = sst [smem:[#allocation20_spill]] %s2697_s13  ;;  %s2810_s17 = sadd.s32 4294967295, %s2709_s16   ;;  %s2709_s16 = sphi %s2795_s16, %s3228_s16   ;;  %s2705_s15 = sphi %s2793_s15, %s3227_s15   ;;  %s2701_s14 = sphi %s2791_s14, %s3226_s14   ;;  %s2697_s13 = sphi %s2789_s13, %s3225_s13  }
   0x9   : > { %s2013_s18 = sadd.s32 4294967294, %s2709_s16   ;;  %p51_p0 = scmp.ne.s32.totalorder %s2701_s14, %s2697_s13 }
   0xa   : > { %p3202_p1 = scmp.eq.s32.totalorder %s2810_s17, 0  ;;  %p249_p3 = scmp.eq.s32.totalorder %s2013_s18, 1 }
   0xb   : > { %p2014_p5 = scmp.ge.s32.totalorder %s2709_s16, 1  ;;  %p282_p7 = scmp.lt.s32.totalorder %s2709_s16, 3 }
   0xc   : > { %p2819_p4 = por %p3202_p1, %p51_p0  ;;  %p2824_p6 = por %p249_p3, %p51_p0 }
   0xd   : > { %p2829_p8 = pnand %p2014_p5, %p282_p7  ;;  %s2711_s22 = smov [#allocation6]  }
   0xe   : > { %s3208_s19 = scalar_select %p2819_p4, 1, 0 }
   0xf   : > { %s3209_s20 = scalar_select %p2824_p6, 1, 0 }
  0x10   : > { %s294_s23 = sshll.u32 %s2711_s22, 4  ;;  %p2386_p9 = pneg %p2829_p8  ;;  %s2833_s23 = int_to_ptr.vmem [resolvable:$true] %s294_s23 }
  0x11   : > { %3210 = sst [smem:[#allocation21_spill]] %s3209_s20  ;;  %s2712_s25 = smov [#allocation8]  }
  0x12   : > { %p2840_p11 = pnand %p2386_p9, %p3202_p1  ;;  %s316_s26 = sshll.u32 %s2712_s25, 4  ;;  %s2844_s26 = int_to_ptr.vmem [resolvable:$true] %s316_s26 }
  0x13   : > { %s2577_s29 = scalar_lea.hbm %s3192_s1, 6144 }
  0x14   : > { %p2578_p12 = scmp.ne.s32.totalorder %s3192_s1, %s2577_s29  ;;  %p2579_p13 = pneg %p2840_p11 }
  0x15   : > { %p2584_p5 = scmp.lt.u32.totalorder %s2577_s29, %s3192_s1 }
  0x16   : > { %p2580_p0 = pnand %p2579_p13, %p2578_p12 }
  0x18   : > { %p2581_p3 = pneg %p2580_p0 }
  0x1a   : > { %p2586_p7 = pnand %p2584_p5, %p2581_p3 }
  0x1c   : > { %2589 = shalt.err (!%p2586_p7)
}
  0x1d   : > { %s2590_s22 = scalar_lea.vmem %s2833_s23, 6144  ;;  %p2598_p2 = scmp.lt.s32.totalorder %s2833_s23, %s2833_s23 }
  0x1e   : > { %p2591_p9 = scmp.ne.s32.totalorder %s2833_s23, %s2590_s22  ;;  %p2599_p12 = scmp.lt.s32.totalorder %s2590_s22, %s2590_s22 }
  0x20   : > { %p2593_p10 = pnand %p2591_p9, %p2579_p13  ;;  %p2600_p0 = por %p2599_p12, %p2598_p2 }
  0x22   : > { %p2594_p1 = pneg %p2593_p10 }
  0x24   : > { %p2601_p6 = pnand %p2600_p0, %p2594_p1 }
  0x26   : > { %2604 = shalt.err (!%p2601_p6)
}
  0x27   : > { %s2713_s25 = smov 64   ;;  %s2714_s27 = smov 4  }
  0x28   : > { %2389 = dma.hbm_to_vmem [thread:$0]  (!%p2840_p11), %s3192_s1, 6144, %s2833_s23, [#allocation7], %s2713_s25, %s2713_s25, %s2714_s27  }
  0x29   : > { %s2605_s12 = scalar_lea.hbm %s3196_s5, 6144 }
  0x2a   : > { %p2606_p2 = scmp.ne.s32.totalorder %s3196_s5, %s2605_s12  ;;  %p2612_p10 = scmp.lt.u32.totalorder %s2605_s12, %s3196_s5 }
  0x2c   : > { %p2608_p1 = pnand %p2606_p2, %p2579_p13 }
  0x2e   : > { %p2609_p6 = pneg %p2608_p1 }
  0x30   : > { %p2614_p3 = pnand %p2612_p10, %p2609_p6 }
  0x32   : > { %2617 = shalt.err (!%p2614_p3)
}
  0x33   : > { %s2618_s23 = scalar_lea.vmem %s2844_s26, 6144  ;;  %p2626_p12 = scmp.lt.s32.totalorder %s2844_s26, %s2844_s26 }
  0x34   : > { %p2619_p5 = scmp.ne.s32.totalorder %s2844_s26, %s2618_s23  ;;  %p2627_p0 = scmp.lt.s32.totalorder %s2618_s23, %s2618_s23 }
  0x36   : > { %p2621_p7 = pnand %p2619_p5, %p2579_p13  ;;  %p2628_p2 = por %p2627_p0, %p2626_p12 }
  0x38   : > { %p2622_p9 = pneg %p2621_p7 }
  0x3a   : > { %p2629_p1 = pnand %p2628_p2, %p2622_p9 }
  0x3c   : > { %2632 = shalt.err (!%p2629_p1)
}
  0x3d   : > { %2392 = dma.hbm_to_vmem [thread:$0]  (!%p2840_p11), %s3196_s5, 6144, %s2844_s26, [#allocation7], %s2713_s25, %s2713_s25, %s2714_s27  }
  0x3e   : > { %s2899_s28 = sadd.s32 1, %s2709_s16   ;;  %s38_s24 = sadd.s32 1, %s2705_s15 }
  0x3f   : > { %s35_s29 = ssub.s32 %s2709_s16, %s2899_s28  ;;  %p45_p13 = scmp.ne.s32.totalorder %s2705_s15, %s2701_s14 }
  0x40   : > { %p36_p6 = scmp.eq.s32.totalorder %s35_s29, 0  ;;  %p46_p10 = scmp.eq.s32.totalorder %s2709_s16, 0 }
  0x41   : > { %p3213_p3 = scmp.eq.s32.totalorder %s2810_s17, 1  ;;  %p2406_p7 = scmp.lt.s32.totalorder %s2709_s16, 2 }
  0x42   : > { %s2915_s11 = scalar_select %p36_p6, %s2705_s15, %s38_s24  }
  0x43   : > { %p2909_p5 = por %p3213_p3, %p45_p13  ;;  %p47_p9 = por %p46_p10, %p45_p13 }
  0x44   : > { %s339_s12 = sand.u32 1, %s2705_s15   ;;  %s2153_s26 = sshll.u32 %s2709_s16, 8 }
  0x45   : > { %s3214_s30 = scalar_select %p2909_p5, 1, 0 }
  0x46   : > { %s2018_s18 = sshll.u32 %s339_s12, 4  ;;  %s2922_s22 = scalar_lea.hbm %s3191_s0, %s2153_s26 }
  0x47   : > { %s343_s23 = scalar_lea.vmem [#allocation3], %s2018_s18  ;;  %p2926_p11 = pnand %p2406_p7, %p47_p9 }
  0x48   : > { %s350_s13 = sshll.u32 %s343_s23, 4  ;;  %s2930_s24 = scalar_lea.sflag [#allocation4], %s339_s12  ;;  %s2924_s13 = int_to_ptr.vmem [resolvable:$true] %s350_s13 }
  0x49   : > { %s2633_s29 = scalar_lea.hbm %s2922_s22, 256  ;;  %p2635_p0 = pneg %p2926_p11 }
  0x4a   : > { %p2634_p12 = scmp.ne.s32.totalorder %s2922_s22, %s2633_s29  ;;  %s2638_s25 = scalar_lea.hbm %s3191_s0, 512 }
  0x4b   : > { %p2639_p13 = scmp.lt.u32.totalorder %s2922_s22, %s3191_s0  ;;  %p2640_p6 = scmp.lt.u32.totalorder %s2638_s25, %s2633_s29 }
  0x4c   : > { %p2636_p2 = pnand %p2635_p0, %p2634_p12  ;;  %p2642_p3 = scmp.lt.u32.totalorder %s2633_s29, %s2922_s22 }
  0x4d   : > { %p2641_p10 = por %p2640_p6, %p2639_p13 }
  0x4e   : > { %p2637_p1 = pneg %p2636_p2 }
  0x4f   : > { %p2643_p7 = por %p2642_p3, %p2641_p10 }
  0x51   : > { %p2644_p9 = pnand %p2643_p7, %p2637_p1 }
  0x53   : > { %2647 = shalt.err (!%p2644_p9)
}
  0x54   : > { %s2648_s12 = scalar_lea.vmem %s2924_s13, 256  ;;  %s2715_s18 = smov [#allocation3]  }
  0x55   : > { %p2649_p12 = scmp.ne.s32.totalorder %s2924_s13, %s2648_s12  ;;  %s2653_s26 = sshll.u32 %s2715_s18, 4  ;;  %s2654_s26 = int_to_ptr.vmem [resolvable:$false] %s2653_s26 }
  0x56   : > { %s2655_s27 = scalar_lea.vmem %s2654_s26, 512  ;;  %p2656_p4 = scmp.lt.s32.totalorder %s2924_s13, %s2654_s26 }
  0x57   : > { %p2651_p2 = pnand %p2649_p12, %p2635_p0  ;;  %p2657_p13 = scmp.lt.s32.totalorder %s2655_s27, %s2648_s12 }
  0x59   : > { %p2652_p5 = pneg %p2651_p2  ;;  %p2658_p6 = por %p2657_p13, %p2656_p4 }
  0x5b   : > { %p2659_p10 = pnand %p2658_p6, %p2652_p5 }
  0x5d   : > { %2662 = shalt.err (!%p2659_p10)
}
  0x5e   : > { %s2716_s29 = smov 128   ;;  %s2717_s25 = smov 8  }
  0x5f   : > { %2396 = dma.hbm_to_vmem [thread:$0]  (!%p2926_p11), %s2922_s22, 256, %s2924_s13, %s2930_s24, %s2716_s29, %s2716_s29, %s2717_s25  }
  0x60   : > { %362 = sbr.rel (%p2829_p8) target bundleno = 1767 (0x6e7), region = 56  ;;  %s2961_s23 = sand.u32 (!%p2829_p8), 1, %s2701_s14  }
  0x61   : > { %s2022_s12 = sshll.u32 (!%p2829_p8), %s2961_s23, 4  ;;  %s365_s18 = scalar_lea.sflag (!%p2829_p8), [#allocation4], %s2961_s23 }
  0x62   : > { %s2965_s26 = scalar_lea.vmem (!%p2829_p8), [#allocation3], %s2022_s12  ;;  %p3216_p4 = scmp.ne.s32.totalorder (!%p2829_p8), %s3208_s19, 0 }
  0x67   : > { %2680 = dma.done.wait (%p3216_p4), %s365_s18, 256  }
  0x68   : > { %2682 = vsyncadd (%p3216_p4), %s365_s18, 4294967040  ;;  %p3217_p5 = scmp.eq.s32.totalorder %s2810_s17, 0 }
  0x6a   : > { %2684 = dma.done.wait (%p3217_p5), [#allocation7], 12288   ;;  %p3218_p8 = pmov %p3217_p5 }
  0x6b   : > { %v2718_v0 = vmov 0.0   ;;  %vm2719_vm0 = vmmov 0   ;;  %v2464_v1 = vld [vmem:[#allocation6 + $0x40] sm:$0xff]   ;;  %v2467_v4 = vld [vmem:[#allocation6 + $0x48] sm:$0xff]   ;;  %v2470_v7 = vld [vmem:[#allocation6 + $0x50] sm:$0xff]   ;;  %s2025_s27 = sshll.u32 %s2961_s23, 5 }
  0x6c   : > { %2686 = vsyncadd (%p3218_p8), [#allocation7], 4294955008  ;;  %2280 = vmatprep.subr.bf16.mxu1 %v2718_v0  ;;  %421 = vst [vmem:[#allocation2] sm:$0xff] %v2718_v0  ;;  %2296 = vmatprep.mubr.msk.bf16.mxu1 %vm2719_vm0, %v2718_v0  ;;  %v2465_v2 = vld [vmem:[#allocation6] sm:$0xff]   ;;  %v2468_v5 = vld [vmem:[#allocation6 + $0x8] sm:$0xff]   ;;  %s3031_s29 = scalar_lea.vmem [#allocation9], %s2025_s27 }
  0x6d   : > { %2156 = vmatprep.subr.bf16.mxu0 %v2464_v1  ;;  %v2466_v3 = vld [vmem:[#allocation6 + $0x80] sm:$0xff]   ;;  %v2469_v6 = vld [vmem:[#allocation6 + $0x88] sm:$0xff]   ;;  %v2471_v8 = vld [vmem:[#allocation6 + $0x10] sm:$0xff]   ;;  %s3071_s22 = scalar_lea.vmem [#allocation10], %s2025_s27  ;;  %s1797_s24 = scalar_lea.sflag [#allocation5], %s2961_s23 }
  0x6e   : > { %2157 = vmatpush3.bf16.msra.mxu0 %v2465_v2  ;;  %2281 = vmatpush3.bf16.msra.mxu1 %v2466_v3  ;;  %v2472_v9 = vld [vmem:[#allocation6 + $0x90] sm:$0xff]   ;;  %v2473_v10 = vld [vmem:[#allocation6 + $0x58] sm:$0xff]   ;;  %v2476_v13 = vld [vmem:[#allocation6 + $0x60] sm:$0xff]  }
  0x6f   : > { %2158 = vmatprep.subr.bf16.mxu0 %v2467_v4  ;;  %2282 = vmatprep.subr.bf16.mxu1 %v2718_v0  ;;  %v2474_v11 = vld [vmem:[#allocation6 + $0x18] sm:$0xff]   ;;  %v2477_v14 = vld [vmem:[#allocation6 + $0x20] sm:$0xff]   ;;  %v2479_v16 = vld [vmem:[#allocation6 + $0x68] sm:$0xff]  }
  0x70   : > { %v2475_v12 = vld [vmem:[#allocation6 + $0x98] sm:$0xff]   ;;  %v2478_v15 = vld [vmem:[#allocation6 + $0xa0] sm:$0xff]   ;;  %v2480_v17 = vld [vmem:[#allocation6 + $0x28] sm:$0xff]  }
  0x71   : > { %v2481_v18 = vld [vmem:[#allocation6 + $0xa8] sm:$0xff]   ;;  %v2482_v19 = vld [vmem:[#allocation6 + $0x70] sm:$0xff]   ;;  %v2485_v24 = vld [vmem:[#allocation6 + $0x78] sm:$0xff]  }
  0x72   : > { %2159 = vmatpush3.bf16.msra.mxu0 %v2468_v5  ;;  %2283 = vmatpush3.bf16.msra.mxu1 %v2469_v6  ;;  %v2483_v20 = vld [vmem:[#allocation6 + $0x30] sm:$0xff]   ;;  %v2988_v23 = vld [vmem:[%s2965_s26 + $0x8] sm:$0xff]  ;;  %v2489_v51 = vld [vmem:[#allocation8 + $0x80] sm:$0xff]  }
  0x73   : > { %2160 = vmatprep.subr.bf16.mxu0 %v2470_v7  ;;  %2284 = vmatprep.subr.bf16.mxu1 %v2718_v0  ;;  %v2484_v21 = vld [vmem:[#allocation6 + $0xb0] sm:$0xff]   ;;  %472 = vst [vmem:[#allocation2 + $0x10] sm:$0xff] %v2988_v23  ;;  %v2486_v25 = vld [vmem:[#allocation6 + $0x38] sm:$0xff]   ;;  %v2027_v37 = vld [vmem:[%s3193_s2] ss:$0 sm:$0xff] }
  0x74   : > { %v2985_v22 = vld [vmem:[%s2965_s26] sm:$0xff]  ;;  %v2487_v26 = vld [vmem:[#allocation6 + $0xb8] sm:$0xff]   ;;  %v2492_v52 = vld [vmem:[#allocation8 + $0x88] sm:$0xff]  }
  0x75   : > { %471 = vst [vmem:[#allocation2 + $0x8] sm:$0xff] %v2985_v22  ;;  %v481_v30 = vpack.c.bf16 %v2988_v23, %v2985_v22  ;;  %v2488_v53 = vld [vmem:[#allocation8 + $0x40] sm:$0xff]   ;;  %v2495_v54 = vld [vmem:[#allocation8 + $0x90] sm:$0xff]   ;;  %v2491_v56 = vld [vmem:[#allocation8 + $0x48] sm:$0xff]  }
  0x76   : > { %2161 = vmatpush3.bf16.msra.mxu0 %v2471_v8  ;;  %2285 = vmatpush3.bf16.msra.mxu1 %v2472_v9  ;;  %v2490_v55 = vld [vmem:[#allocation8] sm:$0xff]   ;;  %v2498_v57 = vld [vmem:[#allocation8 + $0x98] sm:$0xff]   ;;  %v2493_v58 = vld [vmem:[#allocation8 + $0x8] sm:$0xff]  }
  0x77   : > { %2162 = vmatprep.subr.bf16.mxu0 %v2473_v10  ;;  %2286 = vmatprep.subr.bf16.mxu1 %v2718_v0  ;;  %v2494_v59 = vld [vmem:[#allocation8 + $0x50] sm:$0xff]   ;;  %v2501_v60 = vld [vmem:[#allocation8 + $0xa0] sm:$0xff]   ;;  %v2497_v62 = vld [vmem:[#allocation8 + $0x58] sm:$0xff]  }
  0x78   : > { %v2496_v61 = vld [vmem:[#allocation8 + $0x10] sm:$0xff]   ;;  %v2504_v63 = vld [vmem:[#allocation8 + $0xa8] sm:$0xff]   ;;  %v2499_v1 = vld [vmem:[#allocation8 + $0x18] sm:$0xff]  }
  0x79   : > { %v2500_v2 = vld [vmem:[#allocation8 + $0x60] sm:$0xff]   ;;  %v2507_v3 = vld [vmem:[#allocation8 + $0xb0] sm:$0xff]   ;;  %v2503_v5 = vld [vmem:[#allocation8 + $0x68] sm:$0xff]  }
  0x7a   : > { %2163 = vmatpush3.bf16.msra.mxu0 %v2474_v11  ;;  %2287 = vmatpush3.bf16.msra.mxu1 %v2475_v12  ;;  %v2502_v4 = vld [vmem:[#allocation8 + $0x20] sm:$0xff]   ;;  %v2510_v6 = vld [vmem:[#allocation8 + $0xb8] sm:$0xff]   ;;  %v2505_v7 = vld [vmem:[#allocation8 + $0x28] sm:$0xff]  }
  0x7b   : > { %2164 = vmatprep.subr.bf16.mxu0 %v2476_v13  ;;  %2288 = vmatprep.subr.bf16.mxu1 %v2718_v0  ;;  %v2506_v8 = vld [vmem:[#allocation8 + $0x70] sm:$0xff]   ;;  %v2509_v10 = vld [vmem:[#allocation8 + $0x78] sm:$0xff]  }
  0x7c   : > { %v475_v27 = vld [vmem:[#allocation2 + $0x7] sm:$0xff]  ;;  %v476_v28 = vld [vmem:[#allocation2 + $0xf] sm:$0xff] }
  0x7d   : > { %v473_v29 = vld [vmem:[#allocation2 + $0x6] sm:$0xff]  ;;  %v480_v31 = vpack.c.bf16 %v476_v28, %v475_v27  ;;  %v474_v32 = vld [vmem:[#allocation2 + $0xe] sm:$0xff] }
  0x7e   : > { %2165 = vmatpush3.bf16.msra.mxu0 %v2477_v14  ;;  %2289 = vmatpush3.bf16.msra.mxu1 %v2478_v15  ;;  %v479_v33 = vpack.c.bf16 %v474_v32, %v473_v29  ;;  %v2508_v9 = vld [vmem:[#allocation8 + $0x30] sm:$0xff]   ;;  %v2511_v11 = vld [vmem:[#allocation8 + $0x38] sm:$0xff]   ;;  %v2053_v32 = vld [vmem:[%s3195_s4] ss:$0 sm:$0xff] }
  0x7f   : > { %2166 = vmatprep.subr.bf16.mxu0 %v2479_v16  ;;  %2290 = vmatprep.subr.bf16.mxu1 %v2718_v0 }
  0x80   : > { %664 = vmatprep.mubr.bf16.mxu0 %v480_v31 }
  0x82   : > { %2167 = vmatpush3.bf16.msra.mxu0 %v2480_v17  ;;  %2291 = vmatpush3.bf16.msra.mxu1 %v2481_v18 }
  0x83   : > { %2168 = vmatprep.subr.bf16.mxu0 %v2482_v19  ;;  %2292 = vmatprep.subr.bf16.mxu1 %v2718_v0 }
  0x86   : > { %2169 = vmatpush3.bf16.msra.mxu0 %v2483_v20  ;;  %2293 = vmatpush3.bf16.msra.mxu1 %v2484_v21 }
  0x87   : > { %2170 = vmatprep.subr.bf16.mxu0 %v2485_v24  ;;  %2294 = vmatprep.subr.bf16.mxu1 %v2718_v0 }
  0x8a   : > { %2171 = vmatpush3.bf16.msra.mxu0 %v2486_v25  ;;  %2295 = vmatpush3.bf16.msra.mxu1 %v2487_v26 }
  0x8b   : > { %2300 = vmatprep.subr.bf16.mxu1 %v2718_v0  ;;  %2187 = vmatprep.subr.bf16.mxu0 %v2488_v53 }
  0x8d   : > { %665 = vmatmul.mubr.bf16.vlgmr.msra.gmra.mrb[0].mxu0 %v479_v33  ;;  %2297 = vmatmul.mubr.bf16.vlgmr.msra.gmra.mrb[0].mxu1 %v481_v30  ;;  %v2052_v30 = vld [vmem:[%s3194_s3] ss:$0 sm:$0xff] }
  0x8e   : > { %2316 = vmatprep.mubr.msk.bf16.mxu1 %vm2719_vm0, %v2718_v0  ;;  %2301 = vmatpush3.bf16.msra.mxu1 %v2489_v51 }
  0x8f   : > { %2302 = vmatprep.subr.bf16.mxu1 %v2718_v0  ;;  %2188 = vmatpush3.bf16.msra.mxu0 %v2490_v55 }
  0x90   : > { %2189 = vmatprep.subr.bf16.mxu0 %v2491_v56 }
  0x92   : > { %2303 = vmatpush3.bf16.msra.mxu1 %v2492_v52 }
  0x93   : > { %2304 = vmatprep.subr.bf16.mxu1 %v2718_v0  ;;  %2190 = vmatpush3.bf16.msra.mxu0 %v2493_v58 }
  0x94   : > { %2191 = vmatprep.subr.bf16.mxu0 %v2494_v59 }
  0x96   : > { %2305 = vmatpush3.bf16.msra.mxu1 %v2495_v54  ;;  %v2054_v54 = vld [vmem:[%s3197_s6] ss:$0 sm:$0xff] }
  0x97   : > { %2306 = vmatprep.subr.bf16.mxu1 %v2718_v0  ;;  %2192 = vmatpush3.bf16.msra.mxu0 %v2496_v61 }
  0x98   : > { %2193 = vmatprep.subr.bf16.mxu0 %v2497_v62 }
  0x9a   : > { %2307 = vmatpush3.bf16.msra.mxu1 %v2498_v57 }
  0x9b   : > { %2308 = vmatprep.subr.bf16.mxu1 %v2718_v0  ;;  %2194 = vmatpush3.bf16.msra.mxu0 %v2499_v1 }
  0x9c   : > { %2195 = vmatprep.subr.bf16.mxu0 %v2500_v2 }
  0x9e   : > { %2309 = vmatpush3.bf16.msra.mxu1 %v2501_v60 }
  0x9f   : > { %2310 = vmatprep.subr.bf16.mxu1 %v2718_v0  ;;  %2196 = vmatpush3.bf16.msra.mxu0 %v2502_v4  ;;  %v2516_v4 = vld [vmem:[#allocation6 + $0x148] sm:$0xff]  }
  0xa0   : > { %2197 = vmatprep.subr.bf16.mxu0 %v2503_v5  ;;  %v2512_v5 = vld [vmem:[#allocation6 + $0x100] sm:$0xff]  }
  0xa2   : > { %2311 = vmatpush3.bf16.msra.mxu1 %v2504_v63 }
  0xa3   : > { %2312 = vmatprep.subr.bf16.mxu1 %v2718_v0  ;;  %2198 = vmatpush3.bf16.msra.mxu0 %v2505_v7  ;;  %v2514_v7 = vld [vmem:[#allocation6 + $0xc0] sm:$0xff]  }
  0xa4   : > { %2199 = vmatprep.subr.bf16.mxu0 %v2506_v8  ;;  %v2515_v8 = vld [vmem:[#allocation6 + $0x108] sm:$0xff]  }
  0xa6   : > { %2313 = vmatpush3.bf16.msra.mxu1 %v2507_v3  ;;  %v2513_v3 = vld [vmem:[#allocation6 + $0x140] sm:$0xff]  }
  0xa7   : > { %2314 = vmatprep.subr.bf16.mxu1 %v2718_v0  ;;  %2200 = vmatpush3.bf16.msra.mxu0 %v2508_v9  ;;  %v2522_v9 = vld [vmem:[#allocation6 + $0x158] sm:$0xff]  }
  0xa8   : > { %2201 = vmatprep.subr.bf16.mxu0 %v2509_v10  ;;  %v2517_v10 = vld [vmem:[#allocation6 + $0xc8] sm:$0xff]  }
  0xaa   : > { %2315 = vmatpush3.bf16.msra.mxu1 %v2510_v6  ;;  %v2519_v6 = vld [vmem:[#allocation6 + $0x150] sm:$0xff]  }
  0xab   : > { %2320 = vmatprep.subr.bf16.mxu1 %v2718_v0  ;;  %2202 = vmatpush3.bf16.msra.mxu0 %v2511_v11  ;;  %v2518_v11 = vld [vmem:[#allocation6 + $0x110] sm:$0xff]  }
  0xac   : > { %2218 = vmatprep.subr.bf16.mxu0 %v2512_v5 }
 0x160   : > { %v2172_v34 = vpop.f32.mrb[0].mxu0  ;;  %v707_v35 = vpop.f32.mrb[0].mxu1 }
 0x161   : > { %v2173_v36 = vpop.f32.mrb[1].mxu0  ;;  %v2298_v38 = vpop.f32.mrb[1].mxu1 }
 0x162   : > { %v2174_v39 = vadd.f32 %v2173_v36, %v2172_v34  ;;  %v2175_v40 = vpop.f32.mrb[2].mxu0  ;;  %v710_v41 = vpop.f32.mrb[2].mxu1 }
 0x163   : > { %v2176_v42 = vpop.f32.mrb[3].mxu0  ;;  %v2299_v43 = vpop.f32.mrb[3].mxu1 }
 0x164   : > { %v667_v44 = vadd.f32 %v2174_v39, %v2027_v37  ;;  %v2177_v45 = vadd.f32 %v2176_v42, %v2175_v40 }
 0x166   : > { %v3002_v46 = vadd.f32 %v707_v35, %v667_v44  ;;  %v670_v47 = vadd.f32 %v2177_v45, %v2027_v37 }
 0x168   : > { %v3004_v48 = vadd.f32 %v710_v41, %v670_v47  ;;  %716 = vadd.xlane.f32.xlu0 %v3002_v46  ;;  %v722_v49 = vmul.f32 %v3002_v46, %v3002_v46 }
 0x16a   : > { %724 = vadd.xlane.f32.xlu1 %v722_v49  ;;  %v723_v50 = vmul.f32 %v3004_v48, %v3004_v48 }
 0x16c   : > { %718 = vadd.xlane.f32.xlu0 %v3004_v48 }
 0x16e   : > { %726 = vadd.xlane.f32.xlu1 %v723_v50 }
 0x1f5   : > { %v717_v12 = vpop.xlane.xlu0 %716 }
 0x1f6   : > { %v720_v13 = vmul.f32 0.03125, %v717_v12  ;;  %v2525_v12 = vld [vmem:[#allocation6 + $0x160] sm:$0xff]  }
 0x1f7   : > { %v725_v14 = vpop.xlane.xlu1 %724 }
 0x1f8   : > { %v730_v15 = vmul.f32 %v720_v13, %v720_v13  ;;  %v728_v16 = vmul.f32 0.03125, %v725_v14  ;;  %v734_v28 = vsub.f32 %v3002_v46, %v720_v13  ;;  %v2520_v13 = vld [vmem:[#allocation6 + $0xd0] sm:$0xff]   ;;  %v2521_v14 = vld [vmem:[#allocation6 + $0x118] sm:$0xff]  }
 0x1f9   : > { %v719_v17 = vpop.xlane.xlu0 %718 }
 0x1fa   : > { %v732_v18 = vsub.f32 %v728_v16, %v730_v15  ;;  %v721_v19 = vmul.f32 0.03125, %v719_v17  ;;  %v2528_v15 = vld [vmem:[#allocation6 + $0x168] sm:$0xff]   ;;  %v2523_v16 = vld [vmem:[#allocation6 + $0xd8] sm:$0xff]   ;;  %v2524_v17 = vld [vmem:[#allocation6 + $0x120] sm:$0xff]  }
 0x1fb   : > { %v727_v20 = vpop.xlane.xlu1 %726 }
 0x1fc   : > { %v736_v21 = vadd.f32 1e-08, %v732_v18  ;;  %v731_v24 = vmul.f32 %v721_v19, %v721_v19  ;;  %v729_v25 = vmul.f32 0.03125, %v727_v20  ;;  %v735_v34 = vsub.f32 %v3004_v48, %v721_v19  ;;  %v2531_v18 = vld [vmem:[#allocation6 + $0x170] sm:$0xff]   ;;  %v2526_v19 = vld [vmem:[#allocation6 + $0xe0] sm:$0xff]   ;;  %v2527_v20 = vld [vmem:[#allocation6 + $0x128] sm:$0xff]  }
 0x1fe   : > { %2560 = vrsqrt.f32 %v736_v21  ;;  %v733_v26 = vsub.f32 %v729_v25, %v731_v24  ;;  %v2534_v21 = vld [vmem:[#allocation6 + $0x178] sm:$0xff]   ;;  %v2529_v24 = vld [vmem:[#allocation6 + $0xe8] sm:$0xff]   ;;  %v2530_v25 = vld [vmem:[#allocation6 + $0x130] sm:$0xff]  }
 0x200   : > { %v737_v27 = vadd.f32 1e-08, %v733_v26  ;;  %v2532_v26 = vld [vmem:[#allocation6 + $0xf0] sm:$0xff]  }
 0x202   : > { %2562 = vrsqrt.f32 %v737_v27  ;;  %v2533_v27 = vld [vmem:[#allocation6 + $0x138] sm:$0xff]  }
 0x208   : > { %v2561_v29 = vpop.eup %2560 }
 0x209   : > { %v740_v31 = vmul.f32 %v2561_v29, %v734_v28  ;;  %v2535_v28 = vld [vmem:[#allocation6 + $0xf8] sm:$0xff]  }
 0x20b   : > { %v748_v33 = vmul.f32 %v2052_v30, %v740_v31 }
 0x20c   : > { %v2563_v35 = vpop.eup %2562 }
 0x20d   : > { %v756_v36 = vadd.f32 %v2053_v32, %v748_v33  ;;  %v741_v37 = vmul.f32 %v2563_v35, %v735_v34 }
 0x20f   : > { %v758_v38 = vmax.f32 %v756_v36, 0.0  ;;  %v749_v39 = vmul.f32 %v2052_v30, %v741_v37 }
 0x211   : > { %1100 = vst [vmem:[%s3031_s29] sm:$0xff] %v758_v38  ;;  %809 = vst [vmem:[#allocation2 + $0x8] sm:$0xff] %v758_v38  ;;  %v757_v40 = vadd.f32 %v2053_v32, %v749_v39 }
 0x213   : > { %v759_v41 = vmax.f32 %v757_v40, 0.0 }
 0x215   : > { %810 = vst [vmem:[#allocation2 + $0x10] sm:$0xff] %v759_v41  ;;  %1101 = vst [vmem:[%s3031_s29 + $0x8] sm:$0xff] %v759_v41  ;;  %v819_v42 = vpack.c.bf16 %v759_v41, %v758_v38 }
 0x217   : > { %2317 = vmatmul.mubr.bf16.vlgmr.msra.gmra.mrb[4].mxu1 %v819_v42 }
 0x218   : > { %2336 = vmatprep.mubr.msk.bf16.mxu1 %vm2719_vm0, %v2718_v0  ;;  %v813_v43 = vld [vmem:[#allocation2 + $0x6] sm:$0xff]  ;;  %2321 = vmatpush3.bf16.msra.mxu1 %v2513_v3 }
 0x219   : > { %v811_v45 = vld [vmem:[#allocation2 + $0x4] sm:$0xff]  ;;  %2322 = vmatprep.subr.bf16.mxu1 %v2718_v0 }
 0x21c   : > { %v814_v44 = vld [vmem:[#allocation2 + $0xe] sm:$0xff]  ;;  %2323 = vmatpush3.bf16.msra.mxu1 %v2516_v4 }
 0x21d   : > { %v812_v46 = vld [vmem:[#allocation2 + $0xc] sm:$0xff]  ;;  %v818_v47 = vpack.c.bf16 %v814_v44, %v813_v43  ;;  %2324 = vmatprep.subr.bf16.mxu1 %v2718_v0 }
 0x21e   : > { %v817_v48 = vpack.c.bf16 %v812_v46, %v811_v45  ;;  %v2079_v45 = vld [vmem:[%s3198_s7] ss:$0 sm:$0xff] }
 0x21f   : > { %1002 = vmatprep.mubr.bf16.mxu0 %v818_v47 }
 0x220   : > { %1003 = vmatmul.mubr.bf16.vlgmr.msra.gmra.mrb[4].mxu0 %v817_v48  ;;  %2325 = vmatpush3.bf16.msra.mxu1 %v2519_v6  ;;  %v2082_v6 = vld [vmem:[%s3193_s2 + $0x1] ss:$0 sm:$0xff] }
 0x221   : > { %2219 = vmatpush3.bf16.msra.mxu0 %v2514_v7  ;;  %2326 = vmatprep.subr.bf16.mxu1 %v2718_v0 }
 0x222   : > { %2220 = vmatprep.subr.bf16.mxu0 %v2515_v8 }
 0x224   : > { %2327 = vmatpush3.bf16.msra.mxu1 %v2522_v9 }
 0x225   : > { %2221 = vmatpush3.bf16.msra.mxu0 %v2517_v10  ;;  %2328 = vmatprep.subr.bf16.mxu1 %v2718_v0 }
 0x226   : > { %2222 = vmatprep.subr.bf16.mxu0 %v2518_v11 }
 0x228   : > { %2329 = vmatpush3.bf16.msra.mxu1 %v2525_v12 }
 0x229   : > { %2223 = vmatpush3.bf16.msra.mxu0 %v2520_v13  ;;  %2330 = vmatprep.subr.bf16.mxu1 %v2718_v0 }
 0x22a   : > { %2224 = vmatprep.subr.bf16.mxu0 %v2521_v14 }
 0x22c   : > { %2331 = vmatpush3.bf16.msra.mxu1 %v2528_v15 }
 0x22d   : > { %2225 = vmatpush3.bf16.msra.mxu0 %v2523_v16  ;;  %2332 = vmatprep.subr.bf16.mxu1 %v2718_v0 }
 0x22e   : > { %2226 = vmatprep.subr.bf16.mxu0 %v2524_v17  ;;  %v2537_v17 = vld [vmem:[#allocation8 + $0x140] sm:$0xff]  }
 0x230   : > { %2333 = vmatpush3.bf16.msra.mxu1 %v2531_v18  ;;  %v3099_v18 = vld [vmem:[#allocation2] sm:$0xff] }
 0x231   : > { %2227 = vmatpush3.bf16.msra.mxu0 %v2526_v19  ;;  %2334 = vmatprep.subr.bf16.mxu1 %v2718_v0  ;;  %v2540_v19 = vld [vmem:[#allocation8 + $0x148] sm:$0xff]  }
 0x232   : > { %2228 = vmatprep.subr.bf16.mxu0 %v2527_v20  ;;  %v2536_v20 = vld [vmem:[#allocation8 + $0x100] sm:$0xff]  }
 0x234   : > { %2335 = vmatpush3.bf16.msra.mxu1 %v2534_v21  ;;  %v2543_v21 = vld [vmem:[#allocation8 + $0x150] sm:$0xff]  }
 0x235   : > { %2229 = vmatpush3.bf16.msra.mxu0 %v2529_v24  ;;  %2340 = vmatprep.subr.bf16.mxu1 %v2718_v0  ;;  %v2538_v24 = vld [vmem:[#allocation8 + $0xc0] sm:$0xff]  }
 0x236   : > { %2230 = vmatprep.subr.bf16.mxu0 %v2530_v25  ;;  %v2539_v25 = vld [vmem:[#allocation8 + $0x108] sm:$0xff]  }
 0x239   : > { %2231 = vmatpush3.bf16.msra.mxu0 %v2532_v26  ;;  %v2546_v26 = vld [vmem:[#allocation8 + $0x158] sm:$0xff]  }
 0x23a   : > { %2232 = vmatprep.subr.bf16.mxu0 %v2533_v27  ;;  %v2541_v27 = vld [vmem:[#allocation8 + $0xc8] sm:$0xff]  }
 0x23d   : > { %2233 = vmatpush3.bf16.msra.mxu0 %v2535_v28  ;;  %v2542_v28 = vld [vmem:[#allocation8 + $0x110] sm:$0xff]  }
 0x23e   : > { %2249 = vmatprep.subr.bf16.mxu0 %v2536_v20 }
 0x2ea   : > { %v1045_v49 = vpop.f32.mrb[4].mxu1 }
 0x2eb   : > { %v2318_v50 = vpop.f32.mrb[5].mxu1 }
 0x2ec   : > { %v1048_v51 = vpop.f32.mrb[6].mxu1 }
 0x2ed   : > { %v2319_v52 = vpop.f32.mrb[7].mxu1 }
 0x2f3   : > { %v2203_v53 = vpop.f32.mrb[4].mxu0 }
 0x2f4   : > { %v2204_v55 = vpop.f32.mrb[5].mxu0 }
 0x2f5   : > { %v2205_v56 = vadd.f32 %v2204_v55, %v2203_v53  ;;  %v2206_v57 = vpop.f32.mrb[6].mxu0 }
 0x2f6   : > { %v2207_v58 = vpop.f32.mrb[7].mxu0 }
 0x2f7   : > { %v1005_v59 = vadd.f32 %v2205_v56, %v2054_v54  ;;  %v2208_v60 = vadd.f32 %v2207_v58, %v2206_v57 }
 0x2f9   : > { %v1008_v61 = vadd.f32 %v2208_v60, %v2054_v54  ;;  %v3040_v62 = vadd.f32 %v1045_v49, %v1005_v59  ;;  %v2080_v49 = vld [vmem:[%s3199_s8] ss:$0 sm:$0xff] }
 0x2fb   : > { %1054 = vadd.xlane.f32.xlu0 %v3040_v62  ;;  %v3043_v63 = vadd.f32 %v1048_v51, %v1008_v61  ;;  %v1060_v1 = vmul.f32 %v3040_v62, %v3040_v62 }
 0x2fd   : > { %1056 = vadd.xlane.f32.xlu1 %v3043_v63  ;;  %v1061_v2 = vmul.f32 %v3043_v63, %v3043_v63 }
 0x2ff   : > { %1062 = vadd.xlane.f32.xlu0 %v1060_v1 }
 0x301   : > { %1064 = vadd.xlane.f32.xlu1 %v1061_v2 }
 0x388   : > { %v1055_v29 = vpop.xlane.xlu0 %1054 }
 0x389   : > { %v1058_v30 = vmul.f32 0.03125, %v1055_v29  ;;  %v2549_v29 = vld [vmem:[#allocation8 + $0x160] sm:$0xff]  }
 0x38a   : > { %v1057_v31 = vpop.xlane.xlu1 %1056 }
 0x38b   : > { %v1059_v32 = vmul.f32 0.03125, %v1057_v31  ;;  %v1068_v34 = vmul.f32 %v1058_v30, %v1058_v30  ;;  %v1072_v43 = vsub.f32 %v3040_v62, %v1058_v30  ;;  %v2544_v30 = vld [vmem:[#allocation8 + $0xd0] sm:$0xff]   ;;  %v2545_v31 = vld [vmem:[#allocation8 + $0x118] sm:$0xff]  }
 0x38c   : > { %v1063_v33 = vpop.xlane.xlu0 %1062 }
 0x38d   : > { %v1066_v35 = vmul.f32 0.03125, %v1063_v33  ;;  %v1069_v37 = vmul.f32 %v1059_v32, %v1059_v32  ;;  %v1073_v46 = vsub.f32 %v3043_v63, %v1059_v32  ;;  %v2552_v32 = vld [vmem:[#allocation8 + $0x168] sm:$0xff]   ;;  %v2547_v33 = vld [vmem:[#allocation8 + $0xd8] sm:$0xff]  }
 0x38e   : > { %v1065_v36 = vpop.xlane.xlu1 %1064 }
 0x38f   : > { %v1070_v38 = vsub.f32 %v1066_v35, %v1068_v34  ;;  %v1067_v39 = vmul.f32 0.03125, %v1065_v36  ;;  %v2548_v34 = vld [vmem:[#allocation8 + $0x120] sm:$0xff]   ;;  %v2555_v35 = vld [vmem:[#allocation8 + $0x170] sm:$0xff]  }
 0x390   : > { %v2550_v36 = vld [vmem:[#allocation8 + $0xe0] sm:$0xff]  }
 0x391   : > { %v1074_v40 = vadd.f32 1e-08, %v1070_v38  ;;  %v1071_v41 = vsub.f32 %v1067_v39, %v1069_v37  ;;  %v2551_v37 = vld [vmem:[#allocation8 + $0x128] sm:$0xff]   ;;  %v2558_v38 = vld [vmem:[#allocation8 + $0x178] sm:$0xff]  }
 0x392   : > { %v2553_v39 = vld [vmem:[#allocation8 + $0xe8] sm:$0xff]  }
 0x393   : > { %2564 = vrsqrt.f32 %v1074_v40  ;;  %v1075_v42 = vadd.f32 1e-08, %v1071_v41  ;;  %v2554_v40 = vld [vmem:[#allocation8 + $0x130] sm:$0xff]  }
 0x394   : > { %v2556_v41 = vld [vmem:[#allocation8 + $0xf0] sm:$0xff]  }
 0x395   : > { %2566 = vrsqrt.f32 %v1075_v42  ;;  %v2557_v42 = vld [vmem:[#allocation8 + $0x138] sm:$0xff]  }
 0x39d   : > { %v2565_v44 = vpop.eup %2564 }
 0x39e   : > { %v1078_v47 = vmul.f32 %v2565_v44, %v1072_v43  ;;  %v2559_v43 = vld [vmem:[#allocation8 + $0xf8] sm:$0xff]  }
 0x39f   : > { %v2567_v48 = vpop.eup %2566 }
 0x3a0   : > { %v1086_v50 = vmul.f32 %v2079_v45, %v1078_v47  ;;  %v1079_v51 = vmul.f32 %v2567_v48, %v1073_v46 }
 0x3a2   : > { %v1094_v52 = vadd.f32 %v2080_v49, %v1086_v50  ;;  %v1087_v53 = vmul.f32 %v2079_v45, %v1079_v51 }
 0x3a4   : > { %v1096_v54 = vmax.f32 %v1094_v52, 0.0  ;;  %v1095_v55 = vadd.f32 %v2080_v49, %v1087_v53 }
 0x3a6   : > { %v3067_v56 = vadd.f32 %v1096_v54, %v2985_v22  ;;  %v1097_v57 = vmax.f32 %v1095_v55, 0.0 }
 0x3a8   : > { %1102 = vst [vmem:[%s3071_s22] sm:$0xff] %v3067_v56  ;;  %1155 = vst [vmem:[#allocation2 + $0x8] sm:$0xff] %v3067_v56  ;;  %v3077_v58 = vadd.f32 %v1097_v57, %v2988_v23 }
 0x3aa   : > { %1103 = vst [vmem:[%s3071_s22 + $0x8] sm:$0xff] %v3077_v58  ;;  %1156 = vst [vmem:[#allocation2 + $0x10] sm:$0xff] %v3077_v58  ;;  %v1165_v22 = vpack.c.bf16 %v3077_v58, %v3067_v56 }
 0x3ac   : > { %2337 = vmatmul.mubr.bf16.vlgmr.msra.gmra.mrb[8].mxu1 %v1165_v22 }
 0x3ad   : > { %2356 = vmatprep.mubr.msk.bf16.mxu1 %vm2719_vm0, %v2718_v0  ;;  %2341 = vmatpush3.bf16.msra.mxu1 %v2537_v17 }
 0x3ae   : > { %2342 = vmatprep.subr.bf16.mxu1 %v3099_v18 }
 0x3af   : > { %v1159_v59 = vld [vmem:[#allocation2 + $0x6] sm:$0xff] }
 0x3b0   : > { %v1157_v61 = vld [vmem:[#allocation2 + $0x4] sm:$0xff] }
 0x3b1   : > { %v1160_v60 = vld [vmem:[#allocation2 + $0xe] sm:$0xff]  ;;  %2343 = vmatpush3.bf16.msra.mxu1 %v2540_v19  ;;  %v2112_v19 = vld [vmem:[%s3197_s6 + $0x1] ss:$0 sm:$0xff] }
 0x3b2   : > { %v1158_v62 = vld [vmem:[#allocation2 + $0xc] sm:$0xff]  ;;  %v1164_v63 = vpack.c.bf16 %v1160_v60, %v1159_v59  ;;  %2344 = vmatprep.subr.bf16.mxu1 %v3099_v18 }
 0x3b3   : > { %v1163_v1 = vpack.c.bf16 %v1158_v62, %v1157_v61  ;;  %v2109_v61 = vld [vmem:[%s3194_s3 + $0x1] ss:$0 sm:$0xff] }
 0x3b4   : > { %1348 = vmatprep.mubr.bf16.mxu0 %v1164_v63 }
 0x3b5   : > { %1349 = vmatmul.mubr.bf16.vlgmr.msra.gmra.mrb[8].mxu0 %v1163_v1  ;;  %2345 = vmatpush3.bf16.msra.mxu1 %v2543_v21 }
 0x3b6   : > { %2250 = vmatpush3.bf16.msra.mxu0 %v2538_v24  ;;  %2346 = vmatprep.subr.bf16.mxu1 %v3099_v18 }
 0x3b7   : > { %2251 = vmatprep.subr.bf16.mxu0 %v2539_v25 }
 0x3b9   : > { %2347 = vmatpush3.bf16.msra.mxu1 %v2546_v26 }
 0x3ba   : > { %2252 = vmatpush3.bf16.msra.mxu0 %v2541_v27  ;;  %2348 = vmatprep.subr.bf16.mxu1 %v3099_v18 }
 0x3bb   : > { %2253 = vmatprep.subr.bf16.mxu0 %v2542_v28 }
 0x3bd   : > { %2349 = vmatpush3.bf16.msra.mxu1 %v2549_v29 }
 0x3be   : > { %2254 = vmatpush3.bf16.msra.mxu0 %v2544_v30  ;;  %2350 = vmatprep.subr.bf16.mxu1 %v3099_v18 }
 0x3bf   : > { %2255 = vmatprep.subr.bf16.mxu0 %v2545_v31 }
 0x3c1   : > { %2351 = vmatpush3.bf16.msra.mxu1 %v2552_v32 }
 0x3c2   : > { %2256 = vmatpush3.bf16.msra.mxu0 %v2547_v33  ;;  %2352 = vmatprep.subr.bf16.mxu1 %v3099_v18 }
 0x3c3   : > { %2257 = vmatprep.subr.bf16.mxu0 %v2548_v34 }
 0x3c5   : > { %2353 = vmatpush3.bf16.msra.mxu1 %v2555_v35 }
 0x3c6   : > { %2258 = vmatpush3.bf16.msra.mxu0 %v2550_v36  ;;  %2354 = vmatprep.subr.bf16.mxu1 %v3099_v18 }
 0x3c7   : > { %2259 = vmatprep.subr.bf16.mxu0 %v2551_v37 }
 0x3c9   : > { %2355 = vmatpush3.bf16.msra.mxu1 %v2558_v38 }
 0x3ca   : > { %2260 = vmatpush3.bf16.msra.mxu0 %v2553_v39 }
 0x3cb   : > { %2261 = vmatprep.subr.bf16.mxu0 %v2554_v40 }
 0x3ce   : > { %2262 = vmatpush3.bf16.msra.mxu0 %v2556_v41 }
 0x3cf   : > { %2263 = vmatprep.subr.bf16.mxu0 %v2557_v42 }
 0x3d2   : > { %2264 = vmatpush3.bf16.msra.mxu0 %v2559_v43 }
 0x47f   : > { %v1391_v23 = vpop.f32.mrb[8].mxu1 }
 0x480   : > { %v2338_v2 = vpop.f32.mrb[9].mxu1 }
 0x481   : > { %v1394_v3 = vpop.f32.mrb[10].mxu1 }
 0x482   : > { %v2339_v4 = vpop.f32.mrb[11].mxu1 }
 0x488   : > { %v2234_v5 = vpop.f32.mrb[8].mxu0 }
 0x489   : > { %v2235_v7 = vpop.f32.mrb[9].mxu0 }
 0x48a   : > { %v2236_v8 = vadd.f32 %v2235_v7, %v2234_v5  ;;  %v2237_v0 = vpop.f32.mrb[10].mxu0 }
 0x48b   : > { %v2238_v9 = vpop.f32.mrb[11].mxu0 }
 0x48c   : > { %v1351_v10 = vadd.f32 %v2236_v8, %v2082_v6  ;;  %v2239_v11 = vadd.f32 %v2238_v9, %v2237_v0 }
 0x48e   : > { %v1354_v12 = vadd.f32 %v2239_v11, %v2082_v6  ;;  %v3089_v13 = vadd.f32 %v1391_v23, %v1351_v10  ;;  %v2110_v23 = vld [vmem:[%s3195_s4 + $0x1] ss:$0 sm:$0xff] }
 0x490   : > { %1402 = vadd.xlane.f32.xlu0 %v3089_v13  ;;  %v3092_v14 = vadd.f32 %v1394_v3, %v1354_v12  ;;  %v1408_v15 = vmul.f32 %v3089_v13, %v3089_v13 }
 0x492   : > { %1404 = vadd.xlane.f32.xlu1 %v3092_v14  ;;  %v1409_v16 = vmul.f32 %v3092_v14, %v3092_v14 }
 0x494   : > { %1410 = vadd.xlane.f32.xlu0 %v1408_v15 }
 0x496   : > { %1412 = vadd.xlane.f32.xlu1 %v1409_v16 }
 0x51d   : > { %v1403_v44 = vpop.xlane.xlu0 %1402 }
 0x51e   : > { %v1406_v45 = vmul.f32 0.03125, %v1403_v44 }
 0x51f   : > { %v1405_v46 = vpop.xlane.xlu1 %1404 }
 0x520   : > { %v1407_v47 = vmul.f32 0.03125, %v1405_v46  ;;  %v1416_v49 = vmul.f32 %v1406_v45, %v1406_v45  ;;  %v1420_v59 = vsub.f32 %v3089_v13, %v1406_v45 }
 0x521   : > { %v1411_v48 = vpop.xlane.xlu0 %1410 }
 0x522   : > { %v1414_v50 = vmul.f32 0.03125, %v1411_v48  ;;  %v1417_v52 = vmul.f32 %v1407_v47, %v1407_v47  ;;  %v1421_v62 = vsub.f32 %v3092_v14, %v1407_v47  ;;  %v2139_v48 = vld [vmem:[%s3198_s7 + $0x1] ss:$0 sm:$0xff] }
 0x523   : > { %v1413_v51 = vpop.xlane.xlu1 %1412 }
 0x524   : > { %v1418_v53 = vsub.f32 %v1414_v50, %v1416_v49  ;;  %v1415_v54 = vmul.f32 0.03125, %v1413_v51 }
 0x526   : > { %v1422_v55 = vadd.f32 1e-08, %v1418_v53  ;;  %v1419_v57 = vsub.f32 %v1415_v54, %v1417_v52  ;;  %v2140_v52 = vld [vmem:[%s3199_s8 + $0x1] ss:$0 sm:$0xff] }
 0x528   : > { %2568 = vrsqrt.f32 %v1422_v55  ;;  %v1423_v22 = vadd.f32 1e-08, %v1419_v57 }
 0x52a   : > { %2570 = vrsqrt.f32 %v1423_v22 }
 0x532   : > { %v2569_v60 = vpop.eup %2568 }
 0x533   : > { %v1426_v63 = vmul.f32 %v2569_v60, %v1420_v59 }
 0x534   : > { %v2571_v1 = vpop.eup %2570 }
 0x535   : > { %v1434_v2 = vmul.f32 %v2109_v61, %v1426_v63  ;;  %v1427_v3 = vmul.f32 %v2571_v1, %v1421_v62 }
 0x537   : > { %v1442_v4 = vadd.f32 %v2110_v23, %v1434_v2  ;;  %v1435_v5 = vmul.f32 %v2109_v61, %v1427_v3 }
 0x539   : > { %v1444_v6 = vmax.f32 %v1442_v4, 0.0  ;;  %v1443_v7 = vadd.f32 %v2110_v23, %v1435_v5 }
 0x53b   : > { %2141 = vst [vmem:[%s3031_s29 + $0x10] sm:$0xff] %v1444_v6  ;;  %1497 = vst [vmem:[#allocation2 + $0x8] sm:$0xff] %v1444_v6  ;;  %v1445_v8 = vmax.f32 %v1443_v7, 0.0  ;;  %v1505_v12 = vpack.c.bf16 %v1444_v6, %v3099_v18 }
 0x53d   : > { %2142 = vst [vmem:[%s3031_s29 + $0x18] sm:$0xff] %v1445_v8  ;;  %1498 = vst [vmem:[#allocation2 + $0x10] sm:$0xff] %v1445_v8  ;;  %v1507_v0 = vpack.c.bf16 %v1445_v8, %v1444_v6 }
 0x53f   : > { %2357 = vmatmul.mubr.bf16.vlgmr.msra.gmra.mrb[12].mxu1 %v1507_v0 }
 0x542   : > { %v1501_v9 = vld [vmem:[#allocation2 + $0x4] sm:$0xff] }
 0x544   : > { %v1502_v10 = vld [vmem:[#allocation2 + $0xc] sm:$0xff] }
 0x545   : > { %v1506_v11 = vpack.c.bf16 %v1502_v10, %v1501_v9 }
 0x547   : > { %1690 = vmatprep.mubr.bf16.mxu0 %v1506_v11 }
 0x548   : > { %1691 = vmatmul.mubr.bf16.vlgmr.msra.gmra.mrb[12].mxu0 %v1505_v12 }
 0x612   : > { %v1733_v13 = vpop.f32.mrb[12].mxu1 }
 0x613   : > { %v2358_v14 = vpop.f32.mrb[13].mxu1 }
 0x614   : > { %v1736_v15 = vpop.f32.mrb[14].mxu1 }
 0x615   : > { %v2359_v16 = vpop.f32.mrb[15].mxu1 }
 0x61b   : > { %v2265_v17 = vpop.f32.mrb[12].mxu0 }
 0x61c   : > { %v2266_v20 = vpop.f32.mrb[13].mxu0 }
 0x61d   : > { %v2267_v21 = vadd.f32 %v2266_v20, %v2265_v17  ;;  %v2268_v24 = vpop.f32.mrb[14].mxu0 }
 0x61e   : > { %v2269_v25 = vpop.f32.mrb[15].mxu0 }
 0x61f   : > { %v1693_v26 = vadd.f32 %v2267_v21, %v2112_v19  ;;  %v2270_v27 = vadd.f32 %v2269_v25, %v2268_v24 }
 0x621   : > { %v1696_v28 = vadd.f32 %v2270_v27, %v2112_v19  ;;  %v1734_v29 = vadd.f32 %v1733_v13, %v1693_v26 }
 0x623   : > { %1744 = vadd.xlane.f32.xlu0 %v1734_v29  ;;  %v1737_v18 = vadd.f32 %v1736_v15, %v1696_v28  ;;  %v1750_v30 = vmul.f32 %v1734_v29, %v1734_v29 }
 0x625   : > { %1746 = vadd.xlane.f32.xlu1 %v1737_v18  ;;  %v1751_v31 = vmul.f32 %v1737_v18, %v1737_v18 }
 0x627   : > { %1752 = vadd.xlane.f32.xlu0 %v1750_v30 }
 0x629   : > { %1754 = vadd.xlane.f32.xlu1 %v1751_v31 }
 0x6b0   : > { %v1745_v32 = vpop.xlane.xlu0 %1744 }
 0x6b1   : > { %v1748_v33 = vmul.f32 0.03125, %v1745_v32 }
 0x6b2   : > { %v1747_v34 = vpop.xlane.xlu1 %1746 }
 0x6b3   : > { %v1749_v35 = vmul.f32 0.03125, %v1747_v34  ;;  %v1758_v37 = vmul.f32 %v1748_v33, %v1748_v33  ;;  %v1762_v46 = vsub.f32 %v1734_v29, %v1748_v33 }
 0x6b4   : > { %v1753_v36 = vpop.xlane.xlu0 %1752 }
 0x6b5   : > { %v1756_v38 = vmul.f32 0.03125, %v1753_v36  ;;  %v1759_v40 = vmul.f32 %v1749_v35, %v1749_v35  ;;  %v1763_v49 = vsub.f32 %v1737_v18, %v1749_v35 }
 0x6b6   : > { %v1755_v39 = vpop.xlane.xlu1 %1754 }
 0x6b7   : > { %v1760_v41 = vsub.f32 %v1756_v38, %v1758_v37  ;;  %v1757_v42 = vmul.f32 0.03125, %v1755_v39 }
 0x6b9   : > { %v1764_v43 = vadd.f32 1e-08, %v1760_v41  ;;  %v1761_v44 = vsub.f32 %v1757_v42, %v1759_v40 }
 0x6bb   : > { %2572 = vrsqrt.f32 %v1764_v43  ;;  %v1765_v45 = vadd.f32 1e-08, %v1761_v44 }
 0x6bd   : > { %2574 = vrsqrt.f32 %v1765_v45 }
 0x6c5   : > { %v2573_v47 = vpop.eup %2572 }
 0x6c6   : > { %v1768_v50 = vmul.f32 %v2573_v47, %v1762_v46 }
 0x6c7   : > { %v2575_v51 = vpop.eup %2574 }
 0x6c8   : > { %v1776_v53 = vmul.f32 %v2139_v48, %v1768_v50  ;;  %v1769_v54 = vmul.f32 %v2575_v51, %v1763_v49 }
 0x6ca   : > { %v1784_v55 = vadd.f32 %v2140_v52, %v1776_v53  ;;  %v1777_v57 = vmul.f32 %v2139_v48, %v1769_v54 }
 0x6cc   : > { %v1786_v22 = vmax.f32 %v1784_v55, 0.0  ;;  %v1785_v59 = vadd.f32 %v2140_v52, %v1777_v57 }
 0x6ce   : > { %v1788_v60 = vadd.f32 %v1786_v22, %v3067_v56  ;;  %v1787_v61 = vmax.f32 %v1785_v59, 0.0 }
 0x6d0   : > { %2143 = vst [vmem:[%s3071_s22 + $0x10] sm:$0xff] %v1788_v60  ;;  %v1789_v62 = vadd.f32 %v1787_v61, %v3077_v58 }
 0x6d2   : > { %2144 = vst [vmem:[%s3071_s22 + $0x18] sm:$0xff] %v1789_v62 }
 0x6d3   : > { %s2154_s25 = sshll.u32 %s2810_s17, 8  ;;  %s1831_s12 = sshll.u32 %s3031_s29, 4  ;;  %s1832_s12 = int_to_ptr.vmem [resolvable:$true] %s1831_s12 }
 0x6d4   : > { %s1814_s19 = scalar_lea.hbm %s3200_s9, %s2154_s25  ;;  %s2720_s21 = smov 256  }
 0x6d5   : > { %p3219_p11 = scmp.ne.s32.totalorder %s3214_s30, 0  ;;  %s2721_s13 = smov 512  }
 0x6d6   : > { %s2722_s20 = smov 2   ;;  %s2723_s27 = smov 128  }
 0x6d7   : > { %2370 = sst [smem:[#allocation13]] (%p3219_p11), %s2720_s21  ;;  %s2724_s17 = smov 8  }
 0x6d8   : > { %2371 = sst [smem:[#allocation13 + $0x1]] (%p3219_p11), %s2721_s13  ;;  %s2725_s29 = smov [#allocation12]  }
 0x6d9   : > { %2372 = sst [smem:[#allocation13 + $0x2]] (%p3219_p11), %s2722_s20  ;;  %s2726_s18 = smov 0  }
 0x6da   : > { %2373 = sst [smem:[#allocation13 + $0x3]] (%p3219_p11), %s2723_s27 }
 0x6db   : > { %2374 = sst [smem:[#allocation13 + $0x4]] (%p3219_p11), %s2723_s27 }
 0x6dc   : > { %2375 = sst [smem:[#allocation13 + $0x5]] (%p3219_p11), %s2724_s17 }
 0x6dd   : > { %2376 = dma.general (%p3219_p11), %s1832_s12, 512, %s1814_s19, %s1797_s24, %s2725_s29, [#allocation13], %s2726_s18, 0  }
 0x6de   : > { %s1859_s13 = scalar_lea.hbm %s3201_s10, %s2154_s25  ;;  %s1876_s27 = sshll.u32 %s3071_s22, 4  ;;  %s1877_s27 = int_to_ptr.vmem [resolvable:$true] %s1876_s27 }
 0x6df   : > { %s2727_s20 = smov 256   ;;  %s2728_s17 = smov 512  }
 0x6e0   : > { %2377 = sst [smem:[#allocation15]] (%p3219_p11), %s2727_s20  ;;  %s2729_s24 = smov 2  }
 0x6e1   : > { %2378 = sst [smem:[#allocation15 + $0x1]] (%p3219_p11), %s2728_s17  ;;  %s2730_s12 = smov 128  }
 0x6e2   : > { %2379 = sst [smem:[#allocation15 + $0x2]] (%p3219_p11), %s2729_s24  ;;  %s2731_s19 = smov 8  }
 0x6e3   : > { %2380 = sst [smem:[#allocation15 + $0x3]] (%p3219_p11), %s2730_s12  ;;  %s2732_s25 = smov [#allocation14]  }
 0x6e4   : > { %2381 = sst [smem:[#allocation15 + $0x4]] (%p3219_p11), %s2730_s12  ;;  %s2733_s22 = smov 0  }
 0x6e5   : > { %2382 = sst [smem:[#allocation15 + $0x5]] (%p3219_p11), %s2731_s19  ;;  %s3220_s29 = scalar_lea.sflag [#allocation11], %s2961_s23 }
 0x6e6   : > { %2383 = dma.general (%p3219_p11), %s1877_s27, 512, %s1859_s13, %s3220_s29, %s2732_s25, [#allocation15], %s2733_s22, 0  }
 0x6e7 PF: > { %s3221_s18 = sld [smem:[#allocation20_spill]]  ;;  %s3222_s26 = sld [smem:[#allocation21_spill]] }
 0x6e8   : > { %p3224_p1 = scmp.ge.s32.totalorder %s2709_s16, 2 }
 0x6ed   : > { %s1904_s21 = sand.u32 1, %s3221_s18   ;;  %p3223_p0 = scmp.ne.s32.totalorder %s3222_s26, 0 }
 0x6ee   : > { %s1905_s20 = scalar_lea.sflag [#allocation5], %s1904_s21 }
 0x6ef   : > { %p2398_p3 = pnand %p3224_p1, %p3223_p0 }
 0x6f1   : > { %2688 = dma.done.wait (!%p2398_p3), %s1905_s20, 512  }
 0x6f2   : > { %2690 = vsyncadd (!%p2398_p3), %s1905_s20, 4294966784  ;;  %s1914_s17 = scalar_lea.sflag [#allocation11], %s1904_s21 }
 0x6f3   : > { %2692 = dma.done.wait (!%p2398_p3), %s1914_s17, 512  }
 0x6f4   : > { %2694 = vsyncadd (!%p2398_p3), %s1914_s17, 4294966784  ;;  %p28_p7 = scmp.ge.s32.totalorder %s2899_s28, 4   ;;  %s3225_s13 = smov %s2701_s14 }
 0x6f5   : > { %s3226_s14 = smov %s2705_s15  ;;  %s3227_s15 = smov %s2915_s11 }
 0x6f6   : > { %s3228_s16 = smov %s2899_s28  ;;  %30 = sbr.rel (!%p28_p7) target bundleno = 8 (0x8), region = 146 }
 0x6fd   :  { %1919 = vsyncpa [#allocation4], 1 }
 0x6fe   :  { %1921 = vsyncpa [#allocation4 + $0x1], 1 }
 0x6ff   :  { %1922 = vsyncpa [#allocation7], 1 }
 0x700   :  { %1923 = vsyncpa [#allocation5], 1 }
 0x701   :  { %1925 = vsyncpa [#allocation5 + $0x1], 1 }
 0x702   :  { %1926 = vsyncpa [#allocation11], 1 }
 0x703   :  { %1928 = vsyncpa [#allocation11 + $0x1], 1 }

</bundles_post_ra>
